<compile_context>
chip_gen: v7x
topology: tpu7x:2x2x1
jax: 0.10.0
libtpu: 0.0.40
codegen_flags: <defaults>
</compile_context>

<pallas_src>
import jax
import jax.numpy as jnp
from jax.experimental import pallas as pl
from jax.experimental.pallas import tpu as pltpu  # noqa: F401  (TPU backend)

IN_F = 8 * 8 * 6 * 2      # 768
H1 = 700
H2 = 600
OUT = 1

# padded (lane-aligned) sizes
IN_P = 768                # already a multiple of 128
H1_P = 768
H2_P = 640


def _mlp_kernel(x_ref, w1_ref, b1_ref, w2_ref, b2_ref, w3_ref, b3_ref, o_ref):
    """Fused 3-layer MLP: relu(x@W1+b1) @ W2+b2 -> relu -> <.,w3>+b3 -> sigmoid."""
    # Cast activations to bf16 right before each dot so the MXU runs native
    # bf16 x bf16 -> f32 (f32 accumulation via preferred_element_type).
    x = x_ref[...].astype(jnp.bfloat16)
    h1 = jnp.dot(x, w1_ref[...], preferred_element_type=jnp.float32) + b1_ref[...]
    h1 = jnp.maximum(h1, 0.0)

    h2 = jnp.dot(h1.astype(jnp.bfloat16), w2_ref[...],
                 preferred_element_type=jnp.float32) + b2_ref[...]
    h2 = jnp.maximum(h2, 0.0)

    # Layer 3 has a single output column: a cross-lane reduction on the XLU is
    # far cheaper than streaming a 640x128 zero-padded weight through the MXU.
    w3_row = w3_ref[...].astype(jnp.float32)                    # (1, H2_P)
    z = jnp.sum(h2 * w3_row, axis=-1, keepdims=True) + b3_ref[...]  # (B_pad, 1)
    o_ref[...] = jax.nn.sigmoid(z)


def _full_spec(shape):
    # whole array as a single VMEM block (gridless pallas_call)
    return pl.BlockSpec(shape, lambda: (0,) * len(shape))


def init_params(key):
    """Deterministic PyTorch-style (uniform +-1/sqrt(fan_in)) init.

    Weights are stored (in_features, out_features), f32 (the "master" copy).
    """
    k1, k2, k3, k4, k5, k6 = jax.random.split(key, 6)

    def lin(kw, kb, fan_in, fan_out):
        bound = 1.0 / jnp.sqrt(jnp.float32(fan_in))
        w = jax.random.uniform(kw, (fan_in, fan_out), jnp.float32, -bound, bound)
        b = jax.random.uniform(kb, (fan_out,), jnp.float32, -bound, bound)
        return w, b

    w1, b1 = lin(k1, k2, IN_F, H1)
    w2, b2 = lin(k3, k4, H1, H2)
    w3, b3 = lin(k5, k6, H2, OUT)
    return (w1, b1, w2, b2, w3, b3)


def prepare_params(params):
    """One-time padding + bf16 cast of the weights (hoisted off the call path)."""
    w1, b1, w2, b2, w3, b3 = params
    w1p = (jnp.zeros((IN_P, H1_P), jnp.float32).at[:IN_F, :H1].set(w1)
           .astype(jnp.bfloat16))
    b1p = jnp.zeros((1, H1_P), jnp.float32).at[0, :H1].set(b1)
    w2p = (jnp.zeros((H1_P, H2_P), jnp.float32).at[:H1, :H2].set(w2)
           .astype(jnp.bfloat16))
    b2p = jnp.zeros((1, H2_P), jnp.float32).at[0, :H2].set(b2)
    # last layer: single output column stored as a (1, H2_P) row for the reduction
    w3p = (jnp.zeros((1, H2_P), jnp.float32).at[0, :H2].set(w3[:, 0])
           .astype(jnp.bfloat16))
    b3p = jnp.reshape(b3, (1, 1)).astype(jnp.float32)
    return (w1p, b1p, w2p, b2p, w3p, b3p)


@jax.jit
def neural_network3_forward(x, padded_params):
    """x: (B, 2, 6, 8, 8) float32 -> probs (B, 1) float32.

    `padded_params` must come from `prepare_params` (padded, bf16 weights).
    """
    w1p, b1p, w2p, b2p, w3p, b3p = padded_params
    B = x.shape[0]
    b_pad = max(8, ((B + 7) // 8) * 8)      # sublane-align the (f32) batch axis

    # Flatten (identical to nn.Flatten on NCHW-contiguous tensors) + batch pad.
    xf = x.reshape(B, -1).astype(jnp.float32)                   # (B, 768)
    xp = jnp.zeros((b_pad, IN_P), jnp.float32).at[:B, :].set(xf)

    # Gridless call: everything (<3 MB) fits VMEM on v5e/v6e/v7x.
    # (For large batches, add a "parallel" batch grid with constant weight
    #  index_maps so weights stay VMEM-resident and both v7x TCs are used.)
    out_padded = pl.pallas_call(
        _mlp_kernel,
        out_shape=jax.ShapeDtypeStruct((b_pad, 1), jnp.float32),
        in_specs=[
            _full_spec((b_pad, IN_P)),
            _full_spec((IN_P, H1_P)),
            _full_spec((1, H1_P)),
            _full_spec((H1_P, H2_P)),
            _full_spec((1, H2_P)),
            _full_spec((1, H2_P)),
            _full_spec((1, 1)),
        ],
        out_specs=_full_spec((b_pad, 1)),
    )(xp, w1p, b1p, w2p, b2p, w3p, b3p)

    return out_padded[:B, :]                                    # (B, 1)


def _reference_f32(x, params):
    w1, b1, w2, b2, w3, b3 = params
    xf = x.reshape(x.shape[0], -1)
    h1 = jnp.maximum(xf @ w1 + b1, 0.0)
    h2 = jnp.maximum(h1 @ w2 + b2, 0.0)
    return jax.nn.sigmoid(h2 @ w3 + b3)


def _reference_bf16(x, params):
    """Pure-JAX emulation of the kernel's bf16-weight / f32-accumulate path."""
    w1, b1, w2, b2, w3, b3 = params
    xf = x.reshape(x.shape[0], -1)
    h1 = jnp.maximum(
        jnp.dot(xf.astype(jnp.bfloat16), w1.astype(jnp.bfloat16),
                preferred_element_type=jnp.float32) + b1, 0.0)
    h2 = jnp.maximum(
        jnp.dot(h1.astype(jnp.bfloat16), w2.astype(jnp.bfloat16),
                preferred_element_type=jnp.float32) + b2, 0.0)
    w3_row = w3[:, 0].astype(jnp.bfloat16).astype(jnp.float32)[None, :]
    z = jnp.sum(h2 * w3_row, axis=-1, keepdims=True) + b3
    return jax.nn.sigmoid(z)


if __name__ == "__main__":
    key = jax.random.PRNGKey(0)
    kx, kp = jax.random.split(key)

    B = 2
    x = jax.random.normal(kx, (B, 2, 6, 8, 8), jnp.float32)     # flattens to (B, 768)
    params = init_params(kp)
    padded_params = prepare_params(params)                      # pad/cast ONCE

    probs = neural_network3_forward(x, padded_params)
    probs = jax.block_until_ready(probs)

    ref16 = _reference_bf16(x, params)
    ref32 = _reference_f32(x, params)
    assert probs.shape == (B, 1)
    assert jnp.max(jnp.abs(probs - ref16)) < 1e-3   # same-precision path
    assert jnp.max(jnp.abs(probs - ref32)) < 5e-2   # vs full-f32 reference

    print("KERNEL_OK")
</pallas_src>

<mosaic_0001>
module attributes {stable_mosaic.version = 11 : i64} {
  func.func @_mlp_kernel(%arg0: memref<8x768xf32, #tpu.memory_space<vmem>>, %arg1: memref<768x768xbf16, #tpu.memory_space<vmem>>, %arg2: memref<1x768xf32, #tpu.memory_space<vmem>>, %arg3: memref<768x640xbf16, #tpu.memory_space<vmem>>, %arg4: memref<1x640xf32, #tpu.memory_space<vmem>>, %arg5: memref<1x640xbf16, #tpu.memory_space<vmem>>, %arg6: memref<1x1xf32, #tpu.memory_space<vmem>>, %arg7: memref<8x1xf32, #tpu.memory_space<vmem>>) attributes {dimension_semantics = [], scalar_prefetch = 0 : i64, scratch_operands = 0 : i64, tpu.core_type = #tpu.core_type<tc>} {
    %c0 = arith.constant 0 : index
    %c0_0 = arith.constant 0 : index
    %0 = vector.load %arg0[%c0, %c0_0] : memref<8x768xf32, #tpu.memory_space<vmem>>, vector<8x768xf32>
    %1 = arith.truncf %0 : vector<8x768xf32> to vector<8x768xbf16>
    %c0_1 = arith.constant 0 : index
    %c0_2 = arith.constant 0 : index
    %2 = vector.load %arg1[%c0_1, %c0_2] : memref<768x768xbf16, #tpu.memory_space<vmem>>, vector<768x768xbf16>
    %cst = arith.constant dense<0.000000e+00> : vector<8x768xf32>
    %3 = tpu.matmul %1, %2, %cst {dimension_numbers = #tpu.dot_dimension_numbers<[1], [0], [0], [1], [0, 0, 1, 1], [], []>} : vector<8x768xbf16>, vector<768x768xbf16>, vector<8x768xf32> -> vector<8x768xf32>
    %c0_3 = arith.constant 0 : index
    %c0_4 = arith.constant 0 : index
    %4 = vector.load %arg2[%c0_3, %c0_4] : memref<1x768xf32, #tpu.memory_space<vmem>>, vector<1x768xf32>
    %5 = vector.broadcast %4 : vector<1x768xf32> to vector<8x768xf32>
    %6 = arith.addf %3, %5 : vector<8x768xf32>
    %cst_5 = arith.constant 0.000000e+00 : f32
    %7 = vector.broadcast %cst_5 : f32 to vector<8x768xf32>
    %8 = arith.maximumf %6, %7 : vector<8x768xf32>
    %9 = arith.truncf %8 : vector<8x768xf32> to vector<8x768xbf16>
    %c0_6 = arith.constant 0 : index
    %c0_7 = arith.constant 0 : index
    %10 = vector.load %arg3[%c0_6, %c0_7] : memref<768x640xbf16, #tpu.memory_space<vmem>>, vector<768x640xbf16>
    %cst_8 = arith.constant dense<0.000000e+00> : vector<8x640xf32>
    %11 = tpu.matmul %9, %10, %cst_8 {dimension_numbers = #tpu.dot_dimension_numbers<[1], [0], [0], [1], [0, 0, 1, 1], [], []>} : vector<8x768xbf16>, vector<768x640xbf16>, vector<8x640xf32> -> vector<8x640xf32>
    %c0_9 = arith.constant 0 : index
    %c0_10 = arith.constant 0 : index
    %12 = vector.load %arg4[%c0_9, %c0_10] : memref<1x640xf32, #tpu.memory_space<vmem>>, vector<1x640xf32>
    %13 = vector.broadcast %12 : vector<1x640xf32> to vector<8x640xf32>
    %14 = arith.addf %11, %13 : vector<8x640xf32>
    %cst_11 = arith.constant 0.000000e+00 : f32
    %15 = vector.broadcast %cst_11 : f32 to vector<8x640xf32>
    %16 = arith.maximumf %14, %15 : vector<8x640xf32>
    %c0_12 = arith.constant 0 : index
    %c0_13 = arith.constant 0 : index
    %17 = vector.load %arg5[%c0_12, %c0_13] : memref<1x640xbf16, #tpu.memory_space<vmem>>, vector<1x640xbf16>
    %18 = arith.extf %17 : vector<1x640xbf16> to vector<1x640xf32>
    %19 = vector.broadcast %18 : vector<1x640xf32> to vector<8x640xf32>
    %20 = arith.mulf %16, %19 : vector<8x640xf32>
    %cst_14 = arith.constant dense<0.000000e+00> : vector<8xf32>
    %21 = vector.multi_reduction <add>, %20, %cst_14 [1] : vector<8x640xf32> to vector<8xf32>
    %22 = vector.shape_cast %21 : vector<8xf32> to vector<8x1xf32>
    %c0_15 = arith.constant 0 : index
    %c0_16 = arith.constant 0 : index
    %23 = vector.load %arg6[%c0_15, %c0_16] : memref<1x1xf32, #tpu.memory_space<vmem>>, vector<1x1xf32>
    %24 = vector.broadcast %23 : vector<1x1xf32> to vector<8x1xf32>
    %25 = arith.addf %22, %24 : vector<8x1xf32>
    %26 = arith.negf %25 : vector<8x1xf32>
    %27 = math.exp %26 : vector<8x1xf32>
    %cst_17 = arith.constant 1.000000e+00 : f32
    %28 = vector.broadcast %cst_17 : f32 to vector<8x1xf32>
    %29 = arith.addf %28, %27 : vector<8x1xf32>
    %30 = arith.divf %28, %29 : vector<8x1xf32>
    %c0_18 = arith.constant 0 : index
    %c0_19 = arith.constant 0 : index
    %31 = vector.load %arg7[%c0_18, %c0_19] : memref<8x1xf32, #tpu.memory_space<vmem>>, vector<8x1xf32>
    tpu.vector_store %arg7[%c0_18, %c0_19], %30 {strides = array<i32>} : memref<8x1xf32, #tpu.memory_space<vmem>>, vector<8x1xf32>,
    return
  }
}

</mosaic_0001>

<bundles_post_ra>
// kernel: neural_network3_forward.1
= control target key start
LH: loop header
LB: loop body
LE: loop exit
PB: predicated region body
PF: predicated region fallthrough
CT: control target
= control target key end

     0   :  { %s6048_s0 = inlined_call_operand.vmem [shape: f32[8,768], index: 0, kind: input, shape index: {}]   ;;  %s6049_s1 = inlined_call_operand.hbm [shape: bf16[768,768], index: 1, kind: input, shape index: {}]   ;;  %s6050_s2 = inlined_call_operand.hbm [shape: f32[1,768], index: 2, kind: input, shape index: {}]   ;;  %s6051_s3 = inlined_call_operand.hbm [shape: bf16[768,640], index: 3, kind: input, shape index: {}]   ;;  %s6052_s4 = inlined_call_operand.hbm [shape: f32[1,640], index: 4, kind: input, shape index: {}]   ;;  %s6053_s5 = inlined_call_operand.hbm [shape: bf16[1,640], index: 5, kind: input, shape index: {}]   ;;  %s6054_s6 = inlined_call_operand.<no memory space> [shape: f32[1,1], index: 6, kind: input, shape index: {}]   ;;  %s6055_s7 = inlined_call_operand.vmem [shape: f32[8,1], index: 7, kind: output, shape index: {}]  }
   0x1   :  { %v12_v0 = vstv %s6054_s6 }
   0x2   :  { %13 = vst [vmem:[#allocation2] sm:$0x1] %v12_v0 }
   0x3   :  { %14 = vsyncpa [#allocation4], 0 }
   0x4   :  { %15 = vsyncpa [#allocation6], 0 }
   0x5   :  { %16 = vsyncpa [#allocation9], 0  ;;  %s5803_s26 = smov [#allocation5]   ;;  %s5804_s28 = smov [#allocation8]  }
   0x6   :  { %s37_s27 = sshll.u32 %s5803_s26, 4  ;;  %s59_s29 = sshll.u32 %s5804_s28, 4  ;;  %s38_s27 = int_to_ptr.vmem [resolvable:$true] %s37_s27  ;;  %s60_s29 = int_to_ptr.vmem [resolvable:$true] %s59_s29 }
   0x7   :  { %s5687_s9 = scalar_lea.hbm %s6050_s2, 96 }
   0x8   :  { %p5688_p0 = scmp.ne.s32.totalorder %s6050_s2, %s5687_s9  ;;  %p5691_p1 = scmp.lt.u32.totalorder %s5687_s9, %s6050_s2 }
   0xa   :  { %p5693_p2 = pnand %p5691_p1, %p5688_p0 }
   0xc   :  { %5696 = shalt.err (!%p5693_p2)
}
   0xd   :  { %s5697_s13 = scalar_lea.vmem %s38_s27, 96  ;;  %p5702_p4 = scmp.lt.s32.totalorder %s38_s27, %s38_s27 }
   0xe   :  { %p5698_p3 = scmp.ne.s32.totalorder %s38_s27, %s5697_s13  ;;  %p5703_p5 = scmp.lt.s32.totalorder %s5697_s13, %s5697_s13 }
  0x10   :  { %p5704_p6 = por %p5703_p5, %p5702_p4 }
  0x12   :  { %p5705_p7 = pnand %p5704_p6, %p5698_p3 }
  0x14   :  { %5708 = shalt.err (!%p5705_p7)
}
  0x15   :  { %40 = dma.hbm_to_vmem [thread:$0]  %s6050_s2, 96, %s38_s27, [#allocation6]  }
  0x16   :  { %s5709_s18 = scalar_lea.hbm %s6052_s4, 80 }
  0x17   :  { %p5710_p8 = scmp.ne.s32.totalorder %s6052_s4, %s5709_s18  ;;  %p5713_p9 = scmp.lt.u32.totalorder %s5709_s18, %s6052_s4 }
  0x19   :  { %p5715_p10 = pnand %p5713_p9, %p5710_p8 }
  0x1b   :  { %5718 = shalt.err (!%p5715_p10)
}
  0x1c   :  { %s5719_s23 = scalar_lea.vmem %s60_s29, 80  ;;  %s5723_s24 = scalar_lea.vmem %s60_s29, 96 }
  0x1d   :  { %p5720_p11 = scmp.ne.s32.totalorder %s60_s29, %s5719_s23  ;;  %p5724_p12 = scmp.lt.s32.totalorder %s60_s29, %s60_s29 }
  0x1e   :  { %p5725_p13 = scmp.lt.s32.totalorder %s5723_s24, %s5719_s23 }
  0x20   :  { %p5726_p0 = por %p5725_p13, %p5724_p12 }
  0x22   :  { %p5727_p1 = pnand %p5726_p0, %p5720_p11 }
  0x24   :  { %5730 = shalt.err (!%p5727_p1)
}
  0x25   :  { %62 = dma.hbm_to_vmem [thread:$0]  %s6052_s4, 80, %s60_s29, [#allocation9]  }
  0x26   :  { %s5805_s26 = smov [#allocation3]   ;;  %s5731_s8 = scalar_lea.hbm %s6049_s1, 36864 }
  0x27   :  { %s24_s27 = sshll.u32 %s5805_s26, 4  ;;  %p5732_p2 = scmp.ne.s32.totalorder %s6049_s1, %s5731_s8  ;;  %s25_s27 = int_to_ptr.vmem [resolvable:$true] %s24_s27 }
  0x28   :  { %p5735_p3 = scmp.lt.u32.totalorder %s5731_s8, %s6049_s1 }
  0x2a   :  { %p5737_p4 = pnand %p5735_p3, %p5732_p2 }
  0x2c   :  { %5740 = shalt.err (!%p5737_p4)
}
  0x2d   :  { %s5741_s6 = scalar_lea.vmem %s25_s27, 36864  ;;  %p5746_p6 = scmp.lt.s32.totalorder %s25_s27, %s25_s27 }
  0x2e   :  { %p5742_p5 = scmp.ne.s32.totalorder %s25_s27, %s5741_s6  ;;  %p5747_p7 = scmp.lt.s32.totalorder %s5741_s6, %s5741_s6 }
  0x30   :  { %p5748_p8 = por %p5747_p7, %p5746_p6 }
  0x32   :  { %p5749_p9 = pnand %p5748_p8, %p5742_p5 }
  0x34   :  { %5752 = shalt.err (!%p5749_p9)
}
  0x35   :  { %s5806_s4 = smov 384   ;;  %s5807_s29 = smov 24  }
  0x36   :  { %30 = dma.hbm_to_vmem [thread:$0]  %s6049_s1, 36864, %s25_s27, [#allocation4], %s5806_s4, %s5806_s4, %s5807_s29  }
  0x37   :  { %s5808_s15 = smov [#allocation7]   ;;  %s5753_s19 = scalar_lea.hbm %s6051_s3, 30720 }
  0x38   :  { %s46_s16 = sshll.u32 %s5808_s15, 4  ;;  %p5754_p10 = scmp.ne.s32.totalorder %s6051_s3, %s5753_s19  ;;  %s47_s16 = int_to_ptr.vmem [resolvable:$true] %s46_s16 }
  0x39   :  { %p5757_p11 = scmp.lt.u32.totalorder %s5753_s19, %s6051_s3 }
  0x3b   :  { %p5759_p12 = pnand %p5757_p11, %p5754_p10 }
  0x3d   :  { %5762 = shalt.err (!%p5759_p12)
}
  0x3e   :  { %s5763_s24 = scalar_lea.vmem %s47_s16, 30720  ;;  %p5768_p0 = scmp.lt.s32.totalorder %s47_s16, %s47_s16 }
  0x3f   :  { %p5764_p13 = scmp.ne.s32.totalorder %s47_s16, %s5763_s24  ;;  %p5769_p1 = scmp.lt.s32.totalorder %s5763_s24, %s5763_s24 }
  0x41   :  { %p5770_p2 = por %p5769_p1, %p5768_p0 }
  0x43   :  { %p5771_p3 = pnand %p5770_p2, %p5764_p13 }
  0x45   :  { %5774 = shalt.err (!%p5771_p3)
}
  0x46   :  { %s5809_s1 = smov 320   ;;  %s5810_s2 = smov 20  }
  0x47   :  { %52 = dma.hbm_to_vmem [thread:$0]  %s6051_s3, 30720, %s47_s16, [#allocation6], %s5809_s1, %s5809_s1, %s5810_s2  }
  0x48   :  { %s5811_s27 = smov [#allocation10]   ;;  %s5775_s9 = scalar_lea.hbm %s6053_s5, 80 }
  0x49   :  { %s69_s28 = sshll.u32 %s5811_s27, 4  ;;  %p5776_p4 = scmp.ne.s32.totalorder %s6053_s5, %s5775_s9  ;;  %s70_s28 = int_to_ptr.vmem [resolvable:$true] %s69_s28 }
  0x4a   :  { %p5779_p5 = scmp.lt.u32.totalorder %s5775_s9, %s6053_s5 }
  0x4c   :  { %p5781_p6 = pnand %p5779_p5, %p5776_p4 }
  0x4e   :  { %5784 = shalt.err (!%p5781_p6)
}
  0x4f   :  { %s5785_s4 = scalar_lea.vmem %s70_s28, 80  ;;  %s5789_s3 = scalar_lea.vmem %s70_s28, 96 }
  0x50   :  { %p5786_p7 = scmp.ne.s32.totalorder %s70_s28, %s5785_s4  ;;  %p5790_p8 = scmp.lt.s32.totalorder %s70_s28, %s70_s28 }
  0x51   :  { %p5791_p9 = scmp.lt.s32.totalorder %s5789_s3, %s5785_s4 }
  0x53   :  { %p5792_p10 = por %p5791_p9, %p5790_p8 }
  0x55   :  { %p5793_p11 = pnand %p5792_p10, %p5786_p7 }
  0x57   :  { %5796 = shalt.err (!%p5793_p11)
}
  0x58   :  { %72 = dma.hbm_to_vmem [thread:$0]  %s6053_s5, 80, %s70_s28, [#allocation9]  }
  0x59   :  { %5797 = dma.done.wait [#allocation4], 36864  }
  0x5a   :  { %5798 = vsyncadd [#allocation4], 4294930432 }
  0x5b   :  { %5799 = dma.done.wait [#allocation6], 30816  }
  0x5c   :  { %5800 = vsyncadd [#allocation6], 4294936480 }
  0x5d   :  { %5801 = dma.done.wait [#allocation9], 160  }
  0x5e   :  { %5802 = vsyncadd [#allocation9], 4294967136  ;;  %v4915_v1 = vld [vmem:[#allocation3 + $0x4] ss:$24 sps:$4 sm:$0xff]   ;;  %v4919_v3 = vld [vmem:[#allocation3] ss:$24 sps:$4 sm:$0xff]  }
  0x5f   :  { %v4917_v2 = vld [vmem:[#allocation3 + $0x304] ss:$24 sps:$4 sm:$0xff]   ;;  %1863 = vmatprep.subr.bf16.mxu1 %v4915_v1  ;;  %v4920_v4 = vld [vmem:[#allocation3 + $0x300] ss:$24 sps:$4 sm:$0xff]   ;;  %v4921_v5 = vld [vmem:[#allocation3 + $0x34] ss:$24 sps:$4 sm:$0xff]  }
  0x60   :  { %1904 = vmatprep.subr.bf16.mxu0 %v4917_v2  ;;  %1864 = vmatpush1.bf16.msra.mxu1 %v4919_v3  ;;  %v4923_v6 = vld [vmem:[#allocation3 + $0x334] ss:$24 sps:$4 sm:$0xff]   ;;  %v4925_v7 = vld [vmem:[#allocation3 + $0x30] ss:$24 sps:$4 sm:$0xff]   ;;  %v4927_v9 = vld [vmem:[#allocation3 + $0x64] ss:$24 sps:$4 sm:$0xff]  }
  0x61   :  { %1905 = vmatpush1.bf16.msra.mxu0 %v4920_v4  ;;  %1865 = vmatprep.subr.bf16.mxu1 %v4921_v5  ;;  %v4926_v8 = vld [vmem:[#allocation3 + $0x330] ss:$24 sps:$4 sm:$0xff]   ;;  %v4929_v10 = vld [vmem:[#allocation3 + $0x364] ss:$24 sps:$4 sm:$0xff]   ;;  %v4931_v11 = vld [vmem:[#allocation3 + $0x60] ss:$24 sps:$4 sm:$0xff]  }
  0x62   :  { %1906 = vmatprep.subr.bf16.mxu0 %v4923_v6  ;;  %v4932_v12 = vld [vmem:[#allocation3 + $0x360] ss:$24 sps:$4 sm:$0xff]   ;;  %v4933_v13 = vld [vmem:[#allocation3 + $0x94] ss:$24 sps:$4 sm:$0xff]   ;;  %v4937_v15 = vld [vmem:[#allocation3 + $0x90] ss:$24 sps:$4 sm:$0xff]  }
  0x63   :  { %v4935_v14 = vld [vmem:[#allocation3 + $0x394] ss:$24 sps:$4 sm:$0xff]   ;;  %v4938_v16 = vld [vmem:[#allocation3 + $0x390] ss:$24 sps:$4 sm:$0xff]   ;;  %v4939_v17 = vld [vmem:[#allocation3 + $0xc4] ss:$24 sps:$4 sm:$0xff]  }
  0x64   :  { %1866 = vmatpush1.bf16.msra.mxu1 %v4925_v7  ;;  %v4941_v18 = vld [vmem:[#allocation3 + $0x3c4] ss:$24 sps:$4 sm:$0xff]   ;;  %v4943_v19 = vld [vmem:[#allocation3 + $0xc0] ss:$24 sps:$4 sm:$0xff]   ;;  %v4945_v21 = vld [vmem:[#allocation3 + $0xf4] ss:$24 sps:$4 sm:$0xff]  }
  0x65   :  { %1907 = vmatpush1.bf16.msra.mxu0 %v4926_v8  ;;  %1867 = vmatprep.subr.bf16.mxu1 %v4927_v9  ;;  %v4944_v20 = vld [vmem:[#allocation3 + $0x3c0] ss:$24 sps:$4 sm:$0xff]   ;;  %v4947_v22 = vld [vmem:[#allocation3 + $0x3f4] ss:$24 sps:$4 sm:$0xff]   ;;  %v4949_v23 = vld [vmem:[#allocation3 + $0xf0] ss:$24 sps:$4 sm:$0xff]  }
  0x66   :  { %1908 = vmatprep.subr.bf16.mxu0 %v4929_v10  ;;  %v4950_v24 = vld [vmem:[#allocation3 + $0x3f0] ss:$24 sps:$4 sm:$0xff]   ;;  %v4951_v25 = vld [vmem:[#allocation3 + $0x124] ss:$24 sps:$4 sm:$0xff]   ;;  %v4955_v27 = vld [vmem:[#allocation3 + $0x120] ss:$24 sps:$4 sm:$0xff]  }
  0x67   :  { %v4953_v26 = vld [vmem:[#allocation3 + $0x424] ss:$24 sps:$4 sm:$0xff]   ;;  %v4956_v28 = vld [vmem:[#allocation3 + $0x420] ss:$24 sps:$4 sm:$0xff]   ;;  %v4957_v29 = vld [vmem:[#allocation3 + $0x154] ss:$24 sps:$4 sm:$0xff]  }
  0x68   :  { %1868 = vmatpush1.bf16.msra.mxu1 %v4931_v11  ;;  %v4959_v30 = vld [vmem:[#allocation3 + $0x454] ss:$24 sps:$4 sm:$0xff]   ;;  %v4961_v31 = vld [vmem:[#allocation3 + $0x150] ss:$24 sps:$4 sm:$0xff]   ;;  %v4963_v33 = vld [vmem:[#allocation3 + $0x184] ss:$24 sps:$4 sm:$0xff]  }
  0x69   :  { %1909 = vmatpush1.bf16.msra.mxu0 %v4932_v12  ;;  %1869 = vmatprep.subr.bf16.mxu1 %v4933_v13  ;;  %v4962_v32 = vld [vmem:[#allocation3 + $0x450] ss:$24 sps:$4 sm:$0xff]   ;;  %v4965_v34 = vld [vmem:[#allocation3 + $0x484] ss:$24 sps:$4 sm:$0xff]   ;;  %v4967_v35 = vld [vmem:[#allocation3 + $0x180] ss:$24 sps:$4 sm:$0xff]  }
  0x6a   :  { %1910 = vmatprep.subr.bf16.mxu0 %v4935_v14  ;;  %v4968_v36 = vld [vmem:[#allocation3 + $0x480] ss:$24 sps:$4 sm:$0xff]   ;;  %v4969_v37 = vld [vmem:[#allocation3 + $0x1b4] ss:$24 sps:$4 sm:$0xff]   ;;  %v4973_v39 = vld [vmem:[#allocation3 + $0x1b0] ss:$24 sps:$4 sm:$0xff]  }
  0x6b   :  { %v4971_v38 = vld [vmem:[#allocation3 + $0x4b4] ss:$24 sps:$4 sm:$0xff]   ;;  %v4974_v40 = vld [vmem:[#allocation3 + $0x4b0] ss:$24 sps:$4 sm:$0xff]   ;;  %v4975_v41 = vld [vmem:[#allocation3 + $0x1e4] ss:$24 sps:$4 sm:$0xff]  }
  0x6c   :  { %1870 = vmatpush1.bf16.msra.mxu1 %v4937_v15  ;;  %v4977_v42 = vld [vmem:[#allocation3 + $0x4e4] ss:$24 sps:$4 sm:$0xff]   ;;  %v4979_v43 = vld [vmem:[#allocation3 + $0x1e0] ss:$24 sps:$4 sm:$0xff]   ;;  %v4981_v45 = vld [vmem:[#allocation3 + $0x214] ss:$24 sps:$4 sm:$0xff]  }
  0x6d   :  { %1911 = vmatpush1.bf16.msra.mxu0 %v4938_v16  ;;  %1871 = vmatprep.subr.bf16.mxu1 %v4939_v17  ;;  %v4980_v44 = vld [vmem:[#allocation3 + $0x4e0] ss:$24 sps:$4 sm:$0xff]   ;;  %v4983_v46 = vld [vmem:[#allocation3 + $0x514] ss:$24 sps:$4 sm:$0xff]   ;;  %v4985_v48 = vld [vmem:[#allocation3 + $0x210] ss:$24 sps:$4 sm:$0xff]  }
  0x6e   :  { %1912 = vmatprep.subr.bf16.mxu0 %v4941_v18  ;;  %v92_v47 = vld [vmem:[%s6048_s0 + $0x8] sm:$0xff]  ;;  %v94_v50 = vld [vmem:[%s6048_s0 + $0x18] sm:$0xff]  ;;  %v91_v5 = vld [vmem:[%s6048_s0] sm:$0xff]  ;;  %vm4253_vm0 = vcmask 7168  }
  0x6f   :  { %v5918_v49 = vpack.c.bf16 %v92_v47, %v92_v47  ;;  %v4986_v51 = vld [vmem:[#allocation3 + $0x510] ss:$24 sps:$4 sm:$0xff]   ;;  %v4987_v52 = vld [vmem:[#allocation3 + $0x244] ss:$24 sps:$4 sm:$0xff]   ;;  %v5923_v53 = vpack.c.bf16 %v94_v50, %v94_v50  ;;  %v4991_v55 = vld [vmem:[#allocation3 + $0x240] ss:$24 sps:$4 sm:$0xff]   ;;  %v5933_v9 = vpack.c.bf16 %v91_v5, %v91_v5 }
  0x70   :  { %1872 = vmatpush1.bf16.msra.mxu1 %v4943_v19  ;;  %v4989_v54 = vld [vmem:[#allocation3 + $0x544] ss:$24 sps:$4 sm:$0xff]   ;;  %v4992_v56 = vld [vmem:[#allocation3 + $0x540] ss:$24 sps:$4 sm:$0xff]   ;;  %v4993_v57 = vld [vmem:[#allocation3 + $0x274] ss:$24 sps:$4 sm:$0xff]  }
  0x71   :  { %1913 = vmatpush1.bf16.msra.mxu0 %v4944_v20  ;;  %1873 = vmatprep.subr.bf16.mxu1 %v4945_v21  ;;  %v4995_v58 = vld [vmem:[#allocation3 + $0x574] ss:$24 sps:$4 sm:$0xff]   ;;  %v4997_v59 = vld [vmem:[#allocation3 + $0x270] ss:$24 sps:$4 sm:$0xff]   ;;  %v4999_v61 = vld [vmem:[#allocation3 + $0x2a4] ss:$24 sps:$4 sm:$0xff]  }
  0x72   :  { %1914 = vmatprep.subr.bf16.mxu0 %v4947_v22  ;;  %1895 = vmatprep.mubr.bf16.mxu1 %v5918_v49  ;;  %v4998_v60 = vld [vmem:[#allocation3 + $0x570] ss:$24 sps:$4 sm:$0xff]   ;;  %v5001_v62 = vld [vmem:[#allocation3 + $0x5a4] ss:$24 sps:$4 sm:$0xff]   ;;  %v5003_v63 = vld [vmem:[#allocation3 + $0x2a0] ss:$24 sps:$4 sm:$0xff]  }
  0x73   :  { %1936 = vmatprep.mubr.bf16.mxu0 %v5923_v53  ;;  %v5004_v0 = vld [vmem:[#allocation3 + $0x5a0] ss:$24 sps:$4 sm:$0xff]   ;;  %v5005_v1 = vld [vmem:[#allocation3 + $0x2d4] ss:$24 sps:$4 sm:$0xff]   ;;  %v5009_v3 = vld [vmem:[#allocation3 + $0x2d0] ss:$24 sps:$4 sm:$0xff]  }
  0x74   :  { %1874 = vmatpush1.bf16.msra.mxu1 %v4949_v23  ;;  %v5007_v2 = vld [vmem:[#allocation3 + $0x5d4] ss:$24 sps:$4 sm:$0xff]   ;;  %v5010_v4 = vld [vmem:[#allocation3 + $0x5d0] ss:$24 sps:$4 sm:$0xff]   ;;  %v5013_v6 = vld [vmem:[#allocation3 + $0x604] ss:$24 sps:$4 sm:$0xff]  }
  0x75   :  { %1915 = vmatpush1.bf16.msra.mxu0 %v4950_v24  ;;  %1875 = vmatprep.subr.bf16.mxu1 %v4951_v25  ;;  %v93_v7 = vld [vmem:[%s6048_s0 + $0x10] sm:$0xff]  ;;  %v5011_v10 = vld [vmem:[#allocation3 + $0x600] ss:$24 sps:$4 sm:$0xff]   ;;  %v5025_v17 = vld [vmem:[#allocation3 + $0x664] ss:$24 sps:$4 sm:$0xff]  }
  0x76   :  { %1916 = vmatprep.subr.bf16.mxu0 %v4953_v26  ;;  %v5016_v8 = vld [vmem:[#allocation3 + $0xc] ss:$24 sps:$4 sm:$0xff]   ;;  %v5014_v11 = vld [vmem:[#allocation3 + $0x8] ss:$24 sps:$4 sm:$0xff]   ;;  %v5935_v12 = vpack.c.bf16 %v93_v7, %v93_v7  ;;  %v5022_v14 = vld [vmem:[#allocation3 + $0x3c] ss:$24 sps:$4 sm:$0xff]  }
  0x77   :  { %v5019_v13 = vld [vmem:[#allocation3 + $0x634] ss:$24 sps:$4 sm:$0xff]   ;;  %v5017_v15 = vld [vmem:[#allocation3 + $0x630] ss:$24 sps:$4 sm:$0xff]   ;;  %v5023_v19 = vld [vmem:[#allocation3 + $0x660] ss:$24 sps:$4 sm:$0xff]  }
  0x78   :  { %1876 = vmatpush1.bf16.msra.mxu1 %v4955_v27  ;;  %v5020_v16 = vld [vmem:[#allocation3 + $0x38] ss:$24 sps:$4 sm:$0xff]   ;;  %v5028_v18 = vld [vmem:[#allocation3 + $0x6c] ss:$24 sps:$4 sm:$0xff]   ;;  %v5026_v20 = vld [vmem:[#allocation3 + $0x68] ss:$24 sps:$4 sm:$0xff]  }
  0x79   :  { %1917 = vmatpush1.bf16.msra.mxu0 %v4956_v28  ;;  %1877 = vmatprep.subr.bf16.mxu1 %v4957_v29  ;;  %v5031_v21 = vld [vmem:[#allocation3 + $0x694] ss:$24 sps:$4 sm:$0xff]   ;;  %v5029_v23 = vld [vmem:[#allocation3 + $0x690] ss:$24 sps:$4 sm:$0xff]   ;;  %v5037_v25 = vld [vmem:[#allocation3 + $0x6c4] ss:$24 sps:$4 sm:$0xff]  }
  0x7a   :  { %1918 = vmatprep.subr.bf16.mxu0 %v4959_v30  ;;  %v5034_v22 = vld [vmem:[#allocation3 + $0x9c] ss:$24 sps:$4 sm:$0xff]   ;;  %v5032_v24 = vld [vmem:[#allocation3 + $0x98] ss:$24 sps:$4 sm:$0xff]   ;;  %v5040_v26 = vld [vmem:[#allocation3 + $0xcc] ss:$24 sps:$4 sm:$0xff]  }
  0x7b   :  { %v5035_v27 = vld [vmem:[#allocation3 + $0x6c0] ss:$24 sps:$4 sm:$0xff]   ;;  %v5043_v29 = vld [vmem:[#allocation3 + $0x6f4] ss:$24 sps:$4 sm:$0xff]   ;;  %v5065_v50 = vld [vmem:[#allocation3 + $0x7b0] ss:$24 sps:$4 sm:$0xff]  }
  0x7c   :  { %1878 = vmatpush1.bf16.msra.mxu1 %v4961_v31  ;;  %v5038_v28 = vld [vmem:[#allocation3 + $0xc8] ss:$24 sps:$4 sm:$0xff]   ;;  %v5046_v30 = vld [vmem:[#allocation3 + $0xfc] ss:$24 sps:$4 sm:$0xff]  }
  0x7d   :  { %1919 = vmatpush1.bf16.msra.mxu0 %v4962_v32  ;;  %1879 = vmatprep.subr.bf16.mxu1 %v4963_v33  ;;  %v5041_v31 = vld [vmem:[#allocation3 + $0x6f0] ss:$24 sps:$4 sm:$0xff]   ;;  %v5049_v33 = vld [vmem:[#allocation3 + $0x724] ss:$24 sps:$4 sm:$0xff]   ;;  %v5067_v47 = vld [vmem:[#allocation3 + $0x7b4] ss:$24 sps:$4 sm:$0xff]  }
  0x7e   :  { %1920 = vmatprep.subr.bf16.mxu0 %v4965_v34  ;;  %v5044_v32 = vld [vmem:[#allocation3 + $0xf8] ss:$24 sps:$4 sm:$0xff]   ;;  %v5052_v34 = vld [vmem:[#allocation3 + $0x12c] ss:$24 sps:$4 sm:$0xff]  }
  0x7f   :  { %v5097_v5 = vld [vmem:[#allocation3 + $0x8a4] ss:$24 sps:$4 sm:$0xff]   ;;  %v5095_v7 = vld [vmem:[#allocation3 + $0x8a0] ss:$24 sps:$4 sm:$0xff]  }
  0x80   :  { %1880 = vmatpush1.bf16.msra.mxu1 %v4967_v35  ;;  %v96_v35 = vld [vmem:[%s6048_s0 + $0x28] sm:$0xff] }
  0x81   :  { %1921 = vmatpush1.bf16.msra.mxu0 %v4968_v36  ;;  %1881 = vmatprep.subr.bf16.mxu1 %v4969_v37  ;;  %v5943_v36 = vpack.c.bf16 %v96_v35, %v96_v35  ;;  %v5047_v37 = vld [vmem:[#allocation3 + $0x720] ss:$24 sps:$4 sm:$0xff]  }
  0x82   :  { %1922 = vmatprep.subr.bf16.mxu0 %v4971_v38  ;;  %v5050_v38 = vld [vmem:[#allocation3 + $0x128] ss:$24 sps:$4 sm:$0xff]  }
  0x83   :  { %v5131_v35 = vld [vmem:[#allocation3 + $0x3c8] ss:$24 sps:$4 sm:$0xff]  }
  0x84   :  { %1882 = vmatpush1.bf16.msra.mxu1 %v4973_v39  ;;  %v5055_v39 = vld [vmem:[#allocation3 + $0x754] ss:$24 sps:$4 sm:$0xff]  }
  0x85   :  { %1923 = vmatpush1.bf16.msra.mxu0 %v4974_v40  ;;  %1883 = vmatprep.subr.bf16.mxu1 %v4975_v41  ;;  %v5058_v40 = vld [vmem:[#allocation3 + $0x15c] ss:$24 sps:$4 sm:$0xff]   ;;  %v5053_v41 = vld [vmem:[#allocation3 + $0x750] ss:$24 sps:$4 sm:$0xff]  }
  0x86   :  { %1924 = vmatprep.subr.bf16.mxu0 %v4977_v42  ;;  %v5056_v42 = vld [vmem:[#allocation3 + $0x158] ss:$24 sps:$4 sm:$0xff]  }
  0x88   :  { %1884 = vmatpush1.bf16.msra.mxu1 %v4979_v43  ;;  %v5061_v43 = vld [vmem:[#allocation3 + $0x784] ss:$24 sps:$4 sm:$0xff]  }
  0x89   :  { %1925 = vmatpush1.bf16.msra.mxu0 %v4980_v44  ;;  %1885 = vmatprep.subr.bf16.mxu1 %v4981_v45  ;;  %v5064_v44 = vld [vmem:[#allocation3 + $0x18c] ss:$24 sps:$4 sm:$0xff]   ;;  %v5059_v45 = vld [vmem:[#allocation3 + $0x780] ss:$24 sps:$4 sm:$0xff]  }
  0x8a   :  { %1926 = vmatprep.subr.bf16.mxu0 %v4983_v46  ;;  %v5062_v46 = vld [vmem:[#allocation3 + $0x188] ss:$24 sps:$4 sm:$0xff]  }
  0x8c   :  { %1886 = vmatpush1.bf16.msra.mxu1 %v4985_v48  ;;  %v5070_v48 = vld [vmem:[#allocation3 + $0x1bc] ss:$24 sps:$4 sm:$0xff]  }
  0x8d   :  { %1927 = vmatpush1.bf16.msra.mxu0 %v4986_v51  ;;  %1887 = vmatprep.subr.bf16.mxu1 %v4987_v52  ;;  %v5068_v51 = vld [vmem:[#allocation3 + $0x1b8] ss:$24 sps:$4 sm:$0xff]   ;;  %v5073_v52 = vld [vmem:[#allocation3 + $0x7e4] ss:$24 sps:$4 sm:$0xff]  }
  0x8e   :  { %1928 = vmatprep.subr.bf16.mxu0 %v4989_v54  ;;  %v5076_v54 = vld [vmem:[#allocation3 + $0x1ec] ss:$24 sps:$4 sm:$0xff]  }
  0x90   :  { %1888 = vmatpush1.bf16.msra.mxu1 %v4991_v55  ;;  %v5071_v55 = vld [vmem:[#allocation3 + $0x7e0] ss:$24 sps:$4 sm:$0xff]  }
  0x91   :  { %1929 = vmatpush1.bf16.msra.mxu0 %v4992_v56  ;;  %1889 = vmatprep.subr.bf16.mxu1 %v4993_v57  ;;  %v5074_v56 = vld [vmem:[#allocation3 + $0x1e8] ss:$24 sps:$4 sm:$0xff]   ;;  %v5079_v57 = vld [vmem:[#allocation3 + $0x814] ss:$24 sps:$4 sm:$0xff]  }
  0x92   :  { %1930 = vmatprep.subr.bf16.mxu0 %v4995_v58  ;;  %v5082_v58 = vld [vmem:[#allocation3 + $0x21c] ss:$24 sps:$4 sm:$0xff]  }
  0x94   :  { %1890 = vmatpush1.bf16.msra.mxu1 %v4997_v59  ;;  %v5077_v59 = vld [vmem:[#allocation3 + $0x810] ss:$24 sps:$4 sm:$0xff]  }
  0x95   :  { %1931 = vmatpush1.bf16.msra.mxu0 %v4998_v60  ;;  %1891 = vmatprep.subr.bf16.mxu1 %v4999_v61  ;;  %v5080_v60 = vld [vmem:[#allocation3 + $0x218] ss:$24 sps:$4 sm:$0xff]   ;;  %v5085_v61 = vld [vmem:[#allocation3 + $0x844] ss:$24 sps:$4 sm:$0xff]  }
  0x96   :  { %1932 = vmatprep.subr.bf16.mxu0 %v5001_v62  ;;  %v5088_v62 = vld [vmem:[#allocation3 + $0x24c] ss:$24 sps:$4 sm:$0xff]  }
  0x98   :  { %1892 = vmatpush1.bf16.msra.mxu1 %v5003_v63  ;;  %v5083_v63 = vld [vmem:[#allocation3 + $0x840] ss:$24 sps:$4 sm:$0xff]  }
  0x99   :  { %1933 = vmatpush1.bf16.msra.mxu0 %v5004_v0  ;;  %1893 = vmatprep.subr.bf16.mxu1 %v5005_v1  ;;  %v5086_v0 = vld [vmem:[#allocation3 + $0x248] ss:$24 sps:$4 sm:$0xff]   ;;  %v5091_v1 = vld [vmem:[#allocation3 + $0x874] ss:$24 sps:$4 sm:$0xff]  }
  0x9a   :  { %1934 = vmatprep.subr.bf16.mxu0 %v5007_v2  ;;  %v5094_v2 = vld [vmem:[#allocation3 + $0x27c] ss:$24 sps:$4 sm:$0xff]  }
  0x9c   :  { %1894 = vmatpush1.bf16.msra.mxu1 %v5009_v3  ;;  %v5089_v3 = vld [vmem:[#allocation3 + $0x870] ss:$24 sps:$4 sm:$0xff]  }
  0x9d   :  { %1935 = vmatpush1.bf16.msra.mxu0 %v5010_v4  ;;  %1986 = vmatprep.subr.bf16.mxu1 %v5016_v8  ;;  %v5092_v4 = vld [vmem:[#allocation3 + $0x278] ss:$24 sps:$4 sm:$0xff]   ;;  %v5098_v8 = vld [vmem:[#allocation3 + $0x2a8] ss:$24 sps:$4 sm:$0xff]  }
  0x9e   :  { %1945 = vmatprep.subr.bf16.mxu0 %v5013_v6  ;;  %v5100_v6 = vld [vmem:[#allocation3 + $0x2ac] ss:$24 sps:$4 sm:$0xff]  }
  0x9f   :  { %1896 = vmatmul.mubr.bf16.vlgmr.msra.gmra.mrb[0].mxu1 %v5933_v9 }
  0xa0   :  { %1937 = vmatmul.mubr.bf16.vlgmr.msra.gmra.mrb[0].mxu0 %v5935_v12  ;;  %1987 = vmatpush1.bf16.msra.mxu1 %v5014_v11  ;;  %v5106_v11 = vld [vmem:[#allocation3 + $0x2dc] ss:$24 sps:$4 sm:$0xff]  }
  0xa1   :  { %1946 = vmatpush1.bf16.msra.mxu0 %v5011_v10  ;;  %1988 = vmatprep.subr.bf16.mxu1 %v5022_v14  ;;  %v5103_v10 = vld [vmem:[#allocation3 + $0x8d4] ss:$24 sps:$4 sm:$0xff]   ;;  %v5104_v14 = vld [vmem:[#allocation3 + $0x2d8] ss:$24 sps:$4 sm:$0xff]  }
  0xa2   :  { %1947 = vmatprep.subr.bf16.mxu0 %v5019_v13  ;;  %2018 = vmatprep.mubr.bf16.mxu1 %v5918_v49  ;;  %v5101_v13 = vld [vmem:[#allocation3 + $0x8d0] ss:$24 sps:$4 sm:$0xff]  }
  0xa3   :  { %1977 = vmatprep.mubr.bf16.mxu0 %v5943_v36 }
  0xa4   :  { %1989 = vmatpush1.bf16.msra.mxu1 %v5020_v16  ;;  %v5109_v16 = vld [vmem:[#allocation3 + $0x30c] ss:$24 sps:$4 sm:$0xff]  }
  0xa5   :  { %1948 = vmatpush1.bf16.msra.mxu0 %v5017_v15  ;;  %1990 = vmatprep.subr.bf16.mxu1 %v5028_v18  ;;  %v95_v15 = vld [vmem:[%s6048_s0 + $0x20] sm:$0xff] }
  0xa6   :  { %1949 = vmatprep.subr.bf16.mxu0 %v5025_v17  ;;  %v5112_v17 = vld [vmem:[#allocation3 + $0x14] ss:$24 sps:$4 sm:$0xff]   ;;  %v5949_v18 = vpack.c.bf16 %v95_v15, %v95_v15  ;;  %v5191_v15 = vld [vmem:[#allocation3 + $0x5a8] ss:$24 sps:$4 sm:$0xff]  }
  0xa8   :  { %1991 = vmatpush1.bf16.msra.mxu1 %v5026_v20  ;;  %v5110_v20 = vld [vmem:[#allocation3 + $0x10] ss:$24 sps:$4 sm:$0xff]  }
  0xa9   :  { %1950 = vmatpush1.bf16.msra.mxu0 %v5023_v19  ;;  %1992 = vmatprep.subr.bf16.mxu1 %v5034_v22  ;;  %v5107_v19 = vld [vmem:[#allocation3 + $0x308] ss:$24 sps:$4 sm:$0xff]   ;;  %v5118_v22 = vld [vmem:[#allocation3 + $0x44] ss:$24 sps:$4 sm:$0xff]  }
  0xaa   :  { %1951 = vmatprep.subr.bf16.mxu0 %v5031_v21  ;;  %v5115_v21 = vld [vmem:[#allocation3 + $0x33c] ss:$24 sps:$4 sm:$0xff]  }
  0xac   :  { %1993 = vmatpush1.bf16.msra.mxu1 %v5032_v24  ;;  %v5116_v24 = vld [vmem:[#allocation3 + $0x40] ss:$24 sps:$4 sm:$0xff]  }
  0xad   :  { %1952 = vmatpush1.bf16.msra.mxu0 %v5029_v23  ;;  %1994 = vmatprep.subr.bf16.mxu1 %v5040_v26  ;;  %v5113_v23 = vld [vmem:[#allocation3 + $0x338] ss:$24 sps:$4 sm:$0xff]   ;;  %v5124_v26 = vld [vmem:[#allocation3 + $0x74] ss:$24 sps:$4 sm:$0xff]  }
  0xae   :  { %1953 = vmatprep.subr.bf16.mxu0 %v5037_v25  ;;  %v5121_v25 = vld [vmem:[#allocation3 + $0x36c] ss:$24 sps:$4 sm:$0xff]  }
  0xb0   :  { %1995 = vmatpush1.bf16.msra.mxu1 %v5038_v28  ;;  %v5122_v28 = vld [vmem:[#allocation3 + $0x70] ss:$24 sps:$4 sm:$0xff]  }
  0xb1   :  { %1954 = vmatpush1.bf16.msra.mxu0 %v5035_v27  ;;  %1996 = vmatprep.subr.bf16.mxu1 %v5046_v30  ;;  %v5119_v27 = vld [vmem:[#allocation3 + $0x368] ss:$24 sps:$4 sm:$0xff]   ;;  %v5130_v30 = vld [vmem:[#allocation3 + $0xa4] ss:$24 sps:$4 sm:$0xff]  }
  0xb2   :  { %1955 = vmatprep.subr.bf16.mxu0 %v5043_v29  ;;  %v5127_v29 = vld [vmem:[#allocation3 + $0x39c] ss:$24 sps:$4 sm:$0xff]  }
  0xb4   :  { %1997 = vmatpush1.bf16.msra.mxu1 %v5044_v32  ;;  %v5128_v32 = vld [vmem:[#allocation3 + $0xa0] ss:$24 sps:$4 sm:$0xff]  }
  0xb5   :  { %1956 = vmatpush1.bf16.msra.mxu0 %v5041_v31  ;;  %1998 = vmatprep.subr.bf16.mxu1 %v5052_v34  ;;  %v5125_v31 = vld [vmem:[#allocation3 + $0x398] ss:$24 sps:$4 sm:$0xff]   ;;  %v5136_v34 = vld [vmem:[#allocation3 + $0xd4] ss:$24 sps:$4 sm:$0xff]  }
  0xb6   :  { %1957 = vmatprep.subr.bf16.mxu0 %v5049_v33  ;;  %v5133_v33 = vld [vmem:[#allocation3 + $0x3cc] ss:$24 sps:$4 sm:$0xff]  }
  0xb8   :  { %1999 = vmatpush1.bf16.msra.mxu1 %v5050_v38  ;;  %v5142_v38 = vld [vmem:[#allocation3 + $0x104] ss:$24 sps:$4 sm:$0xff]  }
  0xb9   :  { %1958 = vmatpush1.bf16.msra.mxu0 %v5047_v37  ;;  %2000 = vmatprep.subr.bf16.mxu1 %v5058_v40  ;;  %v5139_v37 = vld [vmem:[#allocation3 + $0x3fc] ss:$24 sps:$4 sm:$0xff]   ;;  %v5140_v40 = vld [vmem:[#allocation3 + $0x100] ss:$24 sps:$4 sm:$0xff]  }
  0xba   :  { %1959 = vmatprep.subr.bf16.mxu0 %v5055_v39  ;;  %v5137_v39 = vld [vmem:[#allocation3 + $0x3f8] ss:$24 sps:$4 sm:$0xff]  }
  0xbc   :  { %2001 = vmatpush1.bf16.msra.mxu1 %v5056_v42  ;;  %v5148_v42 = vld [vmem:[#allocation3 + $0x134] ss:$24 sps:$4 sm:$0xff]  }
  0xbd   :  { %1960 = vmatpush1.bf16.msra.mxu0 %v5053_v41  ;;  %2002 = vmatprep.subr.bf16.mxu1 %v5064_v44  ;;  %v5145_v41 = vld [vmem:[#allocation3 + $0x42c] ss:$24 sps:$4 sm:$0xff]   ;;  %v5146_v44 = vld [vmem:[#allocation3 + $0x130] ss:$24 sps:$4 sm:$0xff]  }
  0xbe   :  { %1961 = vmatprep.subr.bf16.mxu0 %v5061_v43  ;;  %v5143_v43 = vld [vmem:[#allocation3 + $0x428] ss:$24 sps:$4 sm:$0xff]  }
  0xc0   :  { %2003 = vmatpush1.bf16.msra.mxu1 %v5062_v46  ;;  %v5154_v46 = vld [vmem:[#allocation3 + $0x164] ss:$24 sps:$4 sm:$0xff]  }
  0xc1   :  { %1962 = vmatpush1.bf16.msra.mxu0 %v5059_v45  ;;  %2004 = vmatprep.subr.bf16.mxu1 %v5070_v48  ;;  %v5151_v45 = vld [vmem:[#allocation3 + $0x45c] ss:$24 sps:$4 sm:$0xff]   ;;  %v5152_v48 = vld [vmem:[#allocation3 + $0x160] ss:$24 sps:$4 sm:$0xff]  }
  0xc2   :  { %1963 = vmatprep.subr.bf16.mxu0 %v5067_v47  ;;  %v5149_v47 = vld [vmem:[#allocation3 + $0x458] ss:$24 sps:$4 sm:$0xff]  }
  0xc4   :  { %2005 = vmatpush1.bf16.msra.mxu1 %v5068_v51  ;;  %v5160_v51 = vld [vmem:[#allocation3 + $0x194] ss:$24 sps:$4 sm:$0xff]  }
  0xc5   :  { %1964 = vmatpush1.bf16.msra.mxu0 %v5065_v50  ;;  %2006 = vmatprep.subr.bf16.mxu1 %v5076_v54  ;;  %v5157_v50 = vld [vmem:[#allocation3 + $0x48c] ss:$24 sps:$4 sm:$0xff]   ;;  %v5158_v54 = vld [vmem:[#allocation3 + $0x190] ss:$24 sps:$4 sm:$0xff]  }
  0xc6   :  { %1965 = vmatprep.subr.bf16.mxu0 %v5073_v52  ;;  %v5155_v52 = vld [vmem:[#allocation3 + $0x488] ss:$24 sps:$4 sm:$0xff]  }
  0xc8   :  { %2007 = vmatpush1.bf16.msra.mxu1 %v5074_v56  ;;  %v5166_v56 = vld [vmem:[#allocation3 + $0x1c4] ss:$24 sps:$4 sm:$0xff]  }
  0xc9   :  { %1966 = vmatpush1.bf16.msra.mxu0 %v5071_v55  ;;  %2008 = vmatprep.subr.bf16.mxu1 %v5082_v58  ;;  %v5163_v55 = vld [vmem:[#allocation3 + $0x4bc] ss:$24 sps:$4 sm:$0xff]   ;;  %v5164_v58 = vld [vmem:[#allocation3 + $0x1c0] ss:$24 sps:$4 sm:$0xff]  }
  0xca   :  { %1967 = vmatprep.subr.bf16.mxu0 %v5079_v57  ;;  %v5161_v57 = vld [vmem:[#allocation3 + $0x4b8] ss:$24 sps:$4 sm:$0xff]  }
  0xcc   :  { %2009 = vmatpush1.bf16.msra.mxu1 %v5080_v60  ;;  %v5172_v60 = vld [vmem:[#allocation3 + $0x1f4] ss:$24 sps:$4 sm:$0xff]  }
  0xcd   :  { %1968 = vmatpush1.bf16.msra.mxu0 %v5077_v59  ;;  %2010 = vmatprep.subr.bf16.mxu1 %v5088_v62  ;;  %v5169_v59 = vld [vmem:[#allocation3 + $0x4ec] ss:$24 sps:$4 sm:$0xff]   ;;  %v5170_v62 = vld [vmem:[#allocation3 + $0x1f0] ss:$24 sps:$4 sm:$0xff]  }
  0xce   :  { %1969 = vmatprep.subr.bf16.mxu0 %v5085_v61  ;;  %v5167_v61 = vld [vmem:[#allocation3 + $0x4e8] ss:$24 sps:$4 sm:$0xff]  }
  0xd0   :  { %2011 = vmatpush1.bf16.msra.mxu1 %v5086_v0  ;;  %v5178_v0 = vld [vmem:[#allocation3 + $0x224] ss:$24 sps:$4 sm:$0xff]  }
  0xd1   :  { %1970 = vmatpush1.bf16.msra.mxu0 %v5083_v63  ;;  %2012 = vmatprep.subr.bf16.mxu1 %v5094_v2  ;;  %v5175_v63 = vld [vmem:[#allocation3 + $0x51c] ss:$24 sps:$4 sm:$0xff]   ;;  %v5176_v2 = vld [vmem:[#allocation3 + $0x220] ss:$24 sps:$4 sm:$0xff]  }
  0xd2   :  { %1971 = vmatprep.subr.bf16.mxu0 %v5091_v1  ;;  %v5173_v1 = vld [vmem:[#allocation3 + $0x518] ss:$24 sps:$4 sm:$0xff]  }
  0xd4   :  { %2013 = vmatpush1.bf16.msra.mxu1 %v5092_v4  ;;  %v5184_v4 = vld [vmem:[#allocation3 + $0x254] ss:$24 sps:$4 sm:$0xff]  }
  0xd5   :  { %1972 = vmatpush1.bf16.msra.mxu0 %v5089_v3  ;;  %2014 = vmatprep.subr.bf16.mxu1 %v5100_v6  ;;  %v5181_v3 = vld [vmem:[#allocation3 + $0x54c] ss:$24 sps:$4 sm:$0xff]   ;;  %v5182_v6 = vld [vmem:[#allocation3 + $0x250] ss:$24 sps:$4 sm:$0xff]  }
  0xd6   :  { %1973 = vmatprep.subr.bf16.mxu0 %v5097_v5  ;;  %v5179_v5 = vld [vmem:[#allocation3 + $0x548] ss:$24 sps:$4 sm:$0xff]  }
  0xd8   :  { %2015 = vmatpush1.bf16.msra.mxu1 %v5098_v8  ;;  %v5190_v8 = vld [vmem:[#allocation3 + $0x284] ss:$24 sps:$4 sm:$0xff]  }
  0xd9   :  { %1974 = vmatpush1.bf16.msra.mxu0 %v5095_v7  ;;  %2016 = vmatprep.subr.bf16.mxu1 %v5106_v11  ;;  %v5187_v7 = vld [vmem:[#allocation3 + $0x57c] ss:$24 sps:$4 sm:$0xff]   ;;  %v5188_v11 = vld [vmem:[#allocation3 + $0x280] ss:$24 sps:$4 sm:$0xff]  }
  0xda   :  { %1975 = vmatprep.subr.bf16.mxu0 %v5103_v10  ;;  %v5185_v10 = vld [vmem:[#allocation3 + $0x578] ss:$24 sps:$4 sm:$0xff]  }
  0xdc   :  { %2017 = vmatpush1.bf16.msra.mxu1 %v5104_v14  ;;  %v5196_v14 = vld [vmem:[#allocation3 + $0x2b4] ss:$24 sps:$4 sm:$0xff]  }
  0xdd   :  { %1976 = vmatpush1.bf16.msra.mxu0 %v5101_v13  ;;  %2027 = vmatprep.subr.bf16.mxu1 %v5109_v16  ;;  %v5193_v13 = vld [vmem:[#allocation3 + $0x5ac] ss:$24 sps:$4 sm:$0xff]   ;;  %v5194_v16 = vld [vmem:[#allocation3 + $0x2b0] ss:$24 sps:$4 sm:$0xff]  }
  0xde   :  { %2109 = vmatprep.subr.bf16.mxu0 %v5112_v17  ;;  %v5199_v17 = vld [vmem:[#allocation3 + $0x5dc] ss:$24 sps:$4 sm:$0xff]  }
  0xdf   :  { %2019 = vmatmul.mubr.bf16.vlgmr.msra.gmra.mrb[4].mxu1 %v5933_v9 }
  0xe0   :  { %1978 = vmatmul.mubr.bf16.vlgmr.msra.gmra.mrb[0].mxu0 %v5949_v18  ;;  %2028 = vmatpush1.bf16.msra.mxu1 %v5107_v19  ;;  %v5202_v19 = vld [vmem:[#allocation3 + $0x2e4] ss:$24 sps:$4 sm:$0xff]  }
  0xe1   :  { %2110 = vmatpush1.bf16.msra.mxu0 %v5110_v20  ;;  %2029 = vmatprep.subr.bf16.mxu1 %v5115_v21  ;;  %v5197_v20 = vld [vmem:[#allocation3 + $0x5d8] ss:$24 sps:$4 sm:$0xff]  }
  0xe2   :  { %2111 = vmatprep.subr.bf16.mxu0 %v5118_v22  ;;  %2059 = vmatprep.mubr.bf16.mxu1 %v5923_v53  ;;  %v5200_v21 = vld [vmem:[#allocation3 + $0x2e0] ss:$24 sps:$4 sm:$0xff]   ;;  %v5205_v22 = vld [vmem:[#allocation3 + $0x60c] ss:$24 sps:$4 sm:$0xff]  }
  0xe3   :  { %2141 = vmatprep.mubr.bf16.mxu0 %v5918_v49  ;;  %v5134_v49 = vld [vmem:[#allocation3 + $0xd0] ss:$24 sps:$4 sm:$0xff]  }
  0xe4   :  { %2030 = vmatpush1.bf16.msra.mxu1 %v5113_v23  ;;  %v5208_v23 = vld [vmem:[#allocation3 + $0x314] ss:$24 sps:$4 sm:$0xff]  }
  0xe5   :  { %2112 = vmatpush1.bf16.msra.mxu0 %v5116_v24  ;;  %2031 = vmatprep.subr.bf16.mxu1 %v5121_v25  ;;  %v5203_v24 = vld [vmem:[#allocation3 + $0x608] ss:$24 sps:$4 sm:$0xff]  }
  0xe6   :  { %2113 = vmatprep.subr.bf16.mxu0 %v5124_v26  ;;  %v5206_v25 = vld [vmem:[#allocation3 + $0x310] ss:$24 sps:$4 sm:$0xff]   ;;  %v5211_v26 = vld [vmem:[#allocation3 + $0x63c] ss:$24 sps:$4 sm:$0xff]  }
  0xe8   :  { %2032 = vmatpush1.bf16.msra.mxu1 %v5119_v27  ;;  %v5214_v27 = vld [vmem:[#allocation3 + $0x344] ss:$24 sps:$4 sm:$0xff]  }
  0xe9   :  { %2114 = vmatpush1.bf16.msra.mxu0 %v5122_v28  ;;  %2033 = vmatprep.subr.bf16.mxu1 %v5127_v29  ;;  %v5209_v28 = vld [vmem:[#allocation3 + $0x638] ss:$24 sps:$4 sm:$0xff]  }
  0xea   :  { %2115 = vmatprep.subr.bf16.mxu0 %v5130_v30  ;;  %v5212_v29 = vld [vmem:[#allocation3 + $0x340] ss:$24 sps:$4 sm:$0xff]   ;;  %v5217_v30 = vld [vmem:[#allocation3 + $0x66c] ss:$24 sps:$4 sm:$0xff]  }
  0xec   :  { %2034 = vmatpush1.bf16.msra.mxu1 %v5125_v31  ;;  %v5220_v31 = vld [vmem:[#allocation3 + $0x374] ss:$24 sps:$4 sm:$0xff]  }
  0xed   :  { %2116 = vmatpush1.bf16.msra.mxu0 %v5128_v32  ;;  %2035 = vmatprep.subr.bf16.mxu1 %v5133_v33  ;;  %v5215_v32 = vld [vmem:[#allocation3 + $0x668] ss:$24 sps:$4 sm:$0xff]  }
  0xee   :  { %2117 = vmatprep.subr.bf16.mxu0 %v5136_v34  ;;  %v5218_v33 = vld [vmem:[#allocation3 + $0x370] ss:$24 sps:$4 sm:$0xff]   ;;  %v5223_v34 = vld [vmem:[#allocation3 + $0x69c] ss:$24 sps:$4 sm:$0xff]  }
  0xf0   :  { %2036 = vmatpush1.bf16.msra.mxu1 %v5131_v35  ;;  %v5221_v35 = vld [vmem:[#allocation3 + $0x698] ss:$24 sps:$4 sm:$0xff]  }
  0xf1   :  { %2118 = vmatpush1.bf16.msra.mxu0 %v5134_v49  ;;  %2037 = vmatprep.subr.bf16.mxu1 %v5139_v37  ;;  %v5224_v49 = vld [vmem:[#allocation3 + $0x3a0] ss:$24 sps:$4 sm:$0xff]   ;;  %v5229_v37 = vld [vmem:[#allocation3 + $0x6cc] ss:$24 sps:$4 sm:$0xff]  }
  0xf2   :  { %2119 = vmatprep.subr.bf16.mxu0 %v5142_v38  ;;  %v5232_v38 = vld [vmem:[#allocation3 + $0x3d4] ss:$24 sps:$4 sm:$0xff]  }
  0xf4   :  { %2038 = vmatpush1.bf16.msra.mxu1 %v5137_v39  ;;  %v5227_v39 = vld [vmem:[#allocation3 + $0x6c8] ss:$24 sps:$4 sm:$0xff]  }
  0xf5   :  { %2120 = vmatpush1.bf16.msra.mxu0 %v5140_v40  ;;  %2039 = vmatprep.subr.bf16.mxu1 %v5145_v41  ;;  %v5235_v40 = vld [vmem:[#allocation3 + $0x6fc] ss:$24 sps:$4 sm:$0xff]  }
  0xf6   :  { %2121 = vmatprep.subr.bf16.mxu0 %v5148_v42  ;;  %v5238_v41 = vld [vmem:[#allocation3 + $0x404] ss:$24 sps:$4 sm:$0xff]   ;;  %v5233_v42 = vld [vmem:[#allocation3 + $0x6f8] ss:$24 sps:$4 sm:$0xff]  }
  0xf8   :  { %2040 = vmatpush1.bf16.msra.mxu1 %v5143_v43  ;;  %v5236_v43 = vld [vmem:[#allocation3 + $0x400] ss:$24 sps:$4 sm:$0xff]  }
  0xf9   :  { %2122 = vmatpush1.bf16.msra.mxu0 %v5146_v44  ;;  %2041 = vmatprep.subr.bf16.mxu1 %v5151_v45  ;;  %v5241_v44 = vld [vmem:[#allocation3 + $0x72c] ss:$24 sps:$4 sm:$0xff]  }
  0xfa   :  { %2123 = vmatprep.subr.bf16.mxu0 %v5154_v46  ;;  %v5244_v45 = vld [vmem:[#allocation3 + $0x434] ss:$24 sps:$4 sm:$0xff]   ;;  %v5239_v46 = vld [vmem:[#allocation3 + $0x728] ss:$24 sps:$4 sm:$0xff]  }
  0xfc   :  { %2042 = vmatpush1.bf16.msra.mxu1 %v5149_v47  ;;  %v5242_v47 = vld [vmem:[#allocation3 + $0x430] ss:$24 sps:$4 sm:$0xff]  }
  0xfd   :  { %2124 = vmatpush1.bf16.msra.mxu0 %v5152_v48  ;;  %2043 = vmatprep.subr.bf16.mxu1 %v5157_v50  ;;  %v5247_v48 = vld [vmem:[#allocation3 + $0x75c] ss:$24 sps:$4 sm:$0xff]  }
  0xfe   :  { %2125 = vmatprep.subr.bf16.mxu0 %v5160_v51  ;;  %v5250_v50 = vld [vmem:[#allocation3 + $0x464] ss:$24 sps:$4 sm:$0xff]   ;;  %v5245_v51 = vld [vmem:[#allocation3 + $0x758] ss:$24 sps:$4 sm:$0xff]  }
 0x100   :  { %2044 = vmatpush1.bf16.msra.mxu1 %v5155_v52  ;;  %v5248_v52 = vld [vmem:[#allocation3 + $0x460] ss:$24 sps:$4 sm:$0xff]  }
 0x101   :  { %2126 = vmatpush1.bf16.msra.mxu0 %v5158_v54  ;;  %2045 = vmatprep.subr.bf16.mxu1 %v5163_v55  ;;  %v5253_v54 = vld [vmem:[#allocation3 + $0x78c] ss:$24 sps:$4 sm:$0xff]  }
 0x102   :  { %2127 = vmatprep.subr.bf16.mxu0 %v5166_v56  ;;  %v5256_v55 = vld [vmem:[#allocation3 + $0x494] ss:$24 sps:$4 sm:$0xff]   ;;  %v5251_v56 = vld [vmem:[#allocation3 + $0x788] ss:$24 sps:$4 sm:$0xff]  }
 0x104   :  { %2046 = vmatpush1.bf16.msra.mxu1 %v5161_v57  ;;  %v5254_v57 = vld [vmem:[#allocation3 + $0x490] ss:$24 sps:$4 sm:$0xff]  }
 0x105   :  { %2128 = vmatpush1.bf16.msra.mxu0 %v5164_v58  ;;  %2047 = vmatprep.subr.bf16.mxu1 %v5169_v59  ;;  %v5259_v58 = vld [vmem:[#allocation3 + $0x7bc] ss:$24 sps:$4 sm:$0xff]  }
 0x106   :  { %2129 = vmatprep.subr.bf16.mxu0 %v5172_v60  ;;  %v5262_v59 = vld [vmem:[#allocation3 + $0x4c4] ss:$24 sps:$4 sm:$0xff]   ;;  %v5257_v60 = vld [vmem:[#allocation3 + $0x7b8] ss:$24 sps:$4 sm:$0xff]  }
 0x108   :  { %2048 = vmatpush1.bf16.msra.mxu1 %v5167_v61  ;;  %v5260_v61 = vld [vmem:[#allocation3 + $0x4c0] ss:$24 sps:$4 sm:$0xff]  }
 0x109   :  { %2130 = vmatpush1.bf16.msra.mxu0 %v5170_v62  ;;  %2049 = vmatprep.subr.bf16.mxu1 %v5175_v63  ;;  %v5265_v62 = vld [vmem:[#allocation3 + $0x7ec] ss:$24 sps:$4 sm:$0xff]  }
 0x10a   :  { %2131 = vmatprep.subr.bf16.mxu0 %v5178_v0  ;;  %v5268_v63 = vld [vmem:[#allocation3 + $0x4f4] ss:$24 sps:$4 sm:$0xff]   ;;  %v5263_v0 = vld [vmem:[#allocation3 + $0x7e8] ss:$24 sps:$4 sm:$0xff]  }
 0x10c   :  { %2050 = vmatpush1.bf16.msra.mxu1 %v5173_v1  ;;  %v5266_v1 = vld [vmem:[#allocation3 + $0x4f0] ss:$24 sps:$4 sm:$0xff]  }
 0x10d   :  { %2132 = vmatpush1.bf16.msra.mxu0 %v5176_v2  ;;  %2051 = vmatprep.subr.bf16.mxu1 %v5181_v3  ;;  %v5271_v2 = vld [vmem:[#allocation3 + $0x81c] ss:$24 sps:$4 sm:$0xff]  }
 0x10e   :  { %2133 = vmatprep.subr.bf16.mxu0 %v5184_v4  ;;  %v5274_v3 = vld [vmem:[#allocation3 + $0x524] ss:$24 sps:$4 sm:$0xff]   ;;  %v5269_v4 = vld [vmem:[#allocation3 + $0x818] ss:$24 sps:$4 sm:$0xff]  }
 0x110   :  { %2052 = vmatpush1.bf16.msra.mxu1 %v5179_v5  ;;  %v5272_v5 = vld [vmem:[#allocation3 + $0x520] ss:$24 sps:$4 sm:$0xff]  }
 0x111   :  { %2134 = vmatpush1.bf16.msra.mxu0 %v5182_v6  ;;  %2053 = vmatprep.subr.bf16.mxu1 %v5187_v7  ;;  %v5277_v6 = vld [vmem:[#allocation3 + $0x84c] ss:$24 sps:$4 sm:$0xff]  }
 0x112   :  { %2135 = vmatprep.subr.bf16.mxu0 %v5190_v8  ;;  %v5280_v7 = vld [vmem:[#allocation3 + $0x554] ss:$24 sps:$4 sm:$0xff]   ;;  %v5275_v8 = vld [vmem:[#allocation3 + $0x848] ss:$24 sps:$4 sm:$0xff]  }
 0x114   :  { %2054 = vmatpush1.bf16.msra.mxu1 %v5185_v10  ;;  %v5278_v10 = vld [vmem:[#allocation3 + $0x550] ss:$24 sps:$4 sm:$0xff]  }
 0x115   :  { %2136 = vmatpush1.bf16.msra.mxu0 %v5188_v11  ;;  %2055 = vmatprep.subr.bf16.mxu1 %v5193_v13  ;;  %v5283_v11 = vld [vmem:[#allocation3 + $0x87c] ss:$24 sps:$4 sm:$0xff]  }
 0x116   :  { %2137 = vmatprep.subr.bf16.mxu0 %v5196_v14  ;;  %v5286_v13 = vld [vmem:[#allocation3 + $0x584] ss:$24 sps:$4 sm:$0xff]   ;;  %v5281_v14 = vld [vmem:[#allocation3 + $0x878] ss:$24 sps:$4 sm:$0xff]  }
 0x118   :  { %2056 = vmatpush1.bf16.msra.mxu1 %v5191_v15  ;;  %v5284_v15 = vld [vmem:[#allocation3 + $0x580] ss:$24 sps:$4 sm:$0xff]  }
 0x119   :  { %2138 = vmatpush1.bf16.msra.mxu0 %v5194_v16  ;;  %2057 = vmatprep.subr.bf16.mxu1 %v5199_v17  ;;  %v5289_v16 = vld [vmem:[#allocation3 + $0x8ac] ss:$24 sps:$4 sm:$0xff]  }
 0x11a   :  { %2139 = vmatprep.subr.bf16.mxu0 %v5202_v19  ;;  %v5292_v17 = vld [vmem:[#allocation3 + $0x5b4] ss:$24 sps:$4 sm:$0xff]   ;;  %v5287_v19 = vld [vmem:[#allocation3 + $0x8a8] ss:$24 sps:$4 sm:$0xff]  }
 0x11c   :  { %2058 = vmatpush1.bf16.msra.mxu1 %v5197_v20  ;;  %v5290_v20 = vld [vmem:[#allocation3 + $0x5b0] ss:$24 sps:$4 sm:$0xff]  }
 0x11d   :  { %2140 = vmatpush1.bf16.msra.mxu0 %v5200_v21  ;;  %2068 = vmatprep.subr.bf16.mxu1 %v5205_v22  ;;  %v5295_v21 = vld [vmem:[#allocation3 + $0x8dc] ss:$24 sps:$4 sm:$0xff]  }
 0x11e   :  { %2150 = vmatprep.subr.bf16.mxu0 %v5208_v23  ;;  %v5298_v22 = vld [vmem:[#allocation3 + $0x5e4] ss:$24 sps:$4 sm:$0xff]   ;;  %v5293_v23 = vld [vmem:[#allocation3 + $0x8d8] ss:$24 sps:$4 sm:$0xff]  }
 0x11f   :  { %2060 = vmatmul.mubr.bf16.vlgmr.msra.gmra.mrb[4].mxu1 %v5935_v12 }
 0x120   :  { %2142 = vmatmul.mubr.bf16.vlgmr.msra.gmra.mrb[4].mxu0 %v5933_v9  ;;  %2069 = vmatpush1.bf16.msra.mxu1 %v5203_v24  ;;  %v5226_v9 = vld [vmem:[#allocation3 + $0x3a4] ss:$24 sps:$4 sm:$0xff]   ;;  %v5296_v24 = vld [vmem:[#allocation3 + $0x5e0] ss:$24 sps:$4 sm:$0xff]  }
 0x121   :  { %2151 = vmatpush1.bf16.msra.mxu0 %v5206_v25  ;;  %2070 = vmatprep.subr.bf16.mxu1 %v5211_v26  ;;  %v5301_v25 = vld [vmem:[#allocation3 + $0x614] ss:$24 sps:$4 sm:$0xff]  }
 0x122   :  { %2152 = vmatprep.subr.bf16.mxu0 %v5214_v27  ;;  %2100 = vmatprep.mubr.bf16.mxu1 %v5943_v36  ;;  %v5325_v26 = vld [vmem:[#allocation7 + $0x4] ss:$20 sps:$4 sm:$0xff]  }
 0x123   :  { %2182 = vmatprep.mubr.bf16.mxu0 %v5923_v53  ;;  %v5230_v53 = vld [vmem:[#allocation3 + $0x3d0] ss:$24 sps:$4 sm:$0xff]  }
 0x124   :  { %2071 = vmatpush1.bf16.msra.mxu1 %v5209_v28  ;;  %v5299_v27 = vld [vmem:[#allocation3 + $0x610] ss:$24 sps:$4 sm:$0xff]  }
 0x125   :  { %2153 = vmatpush1.bf16.msra.mxu0 %v5212_v29  ;;  %2072 = vmatprep.subr.bf16.mxu1 %v5217_v30  ;;  %v5323_v28 = vld [vmem:[#allocation7] ss:$20 sps:$4 sm:$0xff]  }
 0x126   :  { %2154 = vmatprep.subr.bf16.mxu0 %v5220_v31  ;;  %v5304_v29 = vld [vmem:[#allocation3 + $0x644] ss:$24 sps:$4 sm:$0xff]   ;;  %v5302_v31 = vld [vmem:[#allocation3 + $0x640] ss:$24 sps:$4 sm:$0xff]  }
 0x127   :  { %v5331_v30 = vld [vmem:[#allocation7 + $0x2c] ss:$20 sps:$4 sm:$0xff]  }
 0x128   :  { %2073 = vmatpush1.bf16.msra.mxu1 %v5215_v32  ;;  %v5329_v32 = vld [vmem:[#allocation7 + $0x28] ss:$20 sps:$4 sm:$0xff]  }
 0x129   :  { %2155 = vmatpush1.bf16.msra.mxu0 %v5218_v33  ;;  %2074 = vmatprep.subr.bf16.mxu1 %v5223_v34  ;;  %v5307_v33 = vld [vmem:[#allocation3 + $0x674] ss:$24 sps:$4 sm:$0xff]  }
 0x12a   :  { %2156 = vmatprep.subr.bf16.mxu0 %v5226_v9  ;;  %v5337_v34 = vld [vmem:[#allocation7 + $0x54] ss:$20 sps:$4 sm:$0xff]  }
 0x12b   :  { %v5305_v9 = vld [vmem:[#allocation3 + $0x670] ss:$24 sps:$4 sm:$0xff]  }
 0x12c   :  { %2075 = vmatpush1.bf16.msra.mxu1 %v5221_v35  ;;  %v5310_v35 = vld [vmem:[#allocation3 + $0x6a4] ss:$24 sps:$4 sm:$0xff]  }
 0x12d   :  { %2157 = vmatpush1.bf16.msra.mxu0 %v5224_v49  ;;  %2076 = vmatprep.subr.bf16.mxu1 %v5229_v37  ;;  %v5335_v49 = vld [vmem:[#allocation7 + $0x50] ss:$20 sps:$4 sm:$0xff]  }
 0x12e   :  { %2158 = vmatprep.subr.bf16.mxu0 %v5232_v38  ;;  %v5343_v37 = vld [vmem:[#allocation7 + $0x7c] ss:$20 sps:$4 sm:$0xff]  }
 0x12f   :  { %v5313_v38 = vld [vmem:[#allocation3 + $0x6d4] ss:$24 sps:$4 sm:$0xff]  }
 0x130   :  { %2077 = vmatpush1.bf16.msra.mxu1 %v5227_v39  ;;  %v5341_v39 = vld [vmem:[#allocation7 + $0x78] ss:$20 sps:$4 sm:$0xff]  }
 0x131   :  { %2159 = vmatpush1.bf16.msra.mxu0 %v5230_v53  ;;  %2078 = vmatprep.subr.bf16.mxu1 %v5235_v40  ;;  %v5349_v53 = vld [vmem:[#allocation7 + $0xa4] ss:$20 sps:$4 sm:$0xff]  }
 0x132   :  { %2160 = vmatprep.subr.bf16.mxu0 %v5238_v41  ;;  %v5311_v40 = vld [vmem:[#allocation3 + $0x6d0] ss:$24 sps:$4 sm:$0xff]   ;;  %v5316_v41 = vld [vmem:[#allocation3 + $0x704] ss:$24 sps:$4 sm:$0xff]  }
 0x134   :  { %2079 = vmatpush1.bf16.msra.mxu1 %v5233_v42  ;;  %v5355_v42 = vld [vmem:[#allocation7 + $0xcc] ss:$20 sps:$4 sm:$0xff]  }
 0x135   :  { %2161 = vmatpush1.bf16.msra.mxu0 %v5236_v43  ;;  %2080 = vmatprep.subr.bf16.mxu1 %v5241_v44  ;;  %v5314_v43 = vld [vmem:[#allocation3 + $0x700] ss:$24 sps:$4 sm:$0xff]   ;;  %v5319_v44 = vld [vmem:[#allocation3 + $0x734] ss:$24 sps:$4 sm:$0xff]  }
 0x136   :  { %2162 = vmatprep.subr.bf16.mxu0 %v5244_v45  ;;  %v5353_v45 = vld [vmem:[#allocation7 + $0xc8] ss:$20 sps:$4 sm:$0xff]  }
 0x138   :  { %2081 = vmatpush1.bf16.msra.mxu1 %v5239_v46  ;;  %v5361_v46 = vld [vmem:[#allocation7 + $0xf4] ss:$20 sps:$4 sm:$0xff]  }
 0x139   :  { %2163 = vmatpush1.bf16.msra.mxu0 %v5242_v47  ;;  %2082 = vmatprep.subr.bf16.mxu1 %v5247_v48 }
 0x13a   :  { %2164 = vmatprep.subr.bf16.mxu0 %v5250_v50 }
 0x13c   :  { %2083 = vmatpush1.bf16.msra.mxu1 %v5245_v51  ;;  %v5317_v51 = vld [vmem:[#allocation3 + $0x730] ss:$24 sps:$4 sm:$0xff]  }
 0x13d   :  { %2165 = vmatpush1.bf16.msra.mxu0 %v5248_v52  ;;  %2084 = vmatprep.subr.bf16.mxu1 %v5253_v54  ;;  %v5359_v52 = vld [vmem:[#allocation7 + $0xf0] ss:$20 sps:$4 sm:$0xff]  }
 0x13e   :  { %2166 = vmatprep.subr.bf16.mxu0 %v5256_v55  ;;  %v5322_v55 = vld [vmem:[#allocation3 + $0x764] ss:$24 sps:$4 sm:$0xff]  }
 0x140   :  { %2085 = vmatpush1.bf16.msra.mxu1 %v5251_v56  ;;  %v5367_v56 = vld [vmem:[#allocation7 + $0x11c] ss:$20 sps:$4 sm:$0xff]  }
 0x141   :  { %2167 = vmatpush1.bf16.msra.mxu0 %v5254_v57  ;;  %2086 = vmatprep.subr.bf16.mxu1 %v5259_v58  ;;  %v5320_v57 = vld [vmem:[#allocation3 + $0x760] ss:$24 sps:$4 sm:$0xff]   ;;  %v5328_v58 = vld [vmem:[#allocation3 + $0x794] ss:$24 sps:$4 sm:$0xff]  }
 0x142   :  { %2168 = vmatprep.subr.bf16.mxu0 %v5262_v59  ;;  %v5365_v59 = vld [vmem:[#allocation7 + $0x118] ss:$20 sps:$4 sm:$0xff]  }
 0x144   :  { %2087 = vmatpush1.bf16.msra.mxu1 %v5257_v60  ;;  %v5373_v60 = vld [vmem:[#allocation7 + $0x144] ss:$20 sps:$4 sm:$0xff]  }
 0x145   :  { %2169 = vmatpush1.bf16.msra.mxu0 %v5260_v61  ;;  %2088 = vmatprep.subr.bf16.mxu1 %v5265_v62  ;;  %v393_v61 = vlaneseq  ;;  %v5326_v62 = vld [vmem:[#allocation3 + $0x790] ss:$24 sps:$4 sm:$0xff]  }
 0x146   :  { %2170 = vmatprep.subr.bf16.mxu0 %v5268_v63  ;;  %v5334_v63 = vld [vmem:[#allocation3 + $0x7c4] ss:$24 sps:$4 sm:$0xff]  }
 0x148   :  { %2089 = vmatpush1.bf16.msra.mxu1 %v5263_v0  ;;  %v5371_v0 = vld [vmem:[#allocation7 + $0x140] ss:$20 sps:$4 sm:$0xff]  }
 0x149   :  { %2171 = vmatpush1.bf16.msra.mxu0 %v5266_v1  ;;  %2090 = vmatprep.subr.bf16.mxu1 %v5271_v2  ;;  %v5376_v1 = vld [vmem:[#allocation7 + $0x16c] ss:$20 sps:$4 sm:$0xff]   ;;  %v5966_v2 = vshrl.u32 %v393_v61, 7 }
 0x14a   :  { %2172 = vmatprep.subr.bf16.mxu0 %v5274_v3  ;;  %v5332_v3 = vld [vmem:[#allocation3 + $0x7c0] ss:$24 sps:$4 sm:$0xff]  }
 0x14c   :  { %2091 = vmatpush1.bf16.msra.mxu1 %v5269_v4  ;;  %v5340_v4 = vld [vmem:[#allocation3 + $0x7f4] ss:$24 sps:$4 sm:$0xff]  }
 0x14d   :  { %2173 = vmatpush1.bf16.msra.mxu0 %v5272_v5  ;;  %2092 = vmatprep.subr.bf16.mxu1 %v5277_v6  ;;  %v5374_v5 = vld [vmem:[#allocation7 + $0x168] ss:$20 sps:$4 sm:$0xff]  }
 0x14e   :  { %2174 = vmatprep.subr.bf16.mxu0 %v5280_v7  ;;  %v5382_v6 = vld [vmem:[#allocation7 + $0x194] ss:$20 sps:$4 sm:$0xff]  }
 0x14f   :  { %v5338_v7 = vld [vmem:[#allocation3 + $0x7f0] ss:$24 sps:$4 sm:$0xff]  }
 0x150   :  { %2093 = vmatpush1.bf16.msra.mxu1 %v5275_v8  ;;  %v5346_v8 = vld [vmem:[#allocation3 + $0x824] ss:$24 sps:$4 sm:$0xff]  }
 0x151   :  { %2175 = vmatpush1.bf16.msra.mxu0 %v5278_v10  ;;  %2094 = vmatprep.subr.bf16.mxu1 %v5283_v11  ;;  %v5380_v10 = vld [vmem:[#allocation7 + $0x190] ss:$20 sps:$4 sm:$0xff]  }
 0x152   :  { %2176 = vmatprep.subr.bf16.mxu0 %v5286_v13  ;;  %v5388_v11 = vld [vmem:[#allocation7 + $0x1bc] ss:$20 sps:$4 sm:$0xff]  }
 0x153   :  { %v5344_v13 = vld [vmem:[#allocation3 + $0x820] ss:$24 sps:$4 sm:$0xff]  }
 0x154   :  { %2095 = vmatpush1.bf16.msra.mxu1 %v5281_v14  ;;  %v5352_v14 = vld [vmem:[#allocation3 + $0x854] ss:$24 sps:$4 sm:$0xff]  }
 0x155   :  { %2177 = vmatpush1.bf16.msra.mxu0 %v5284_v15  ;;  %2096 = vmatprep.subr.bf16.mxu1 %v5289_v16  ;;  %v5386_v15 = vld [vmem:[#allocation7 + $0x1b8] ss:$20 sps:$4 sm:$0xff]  }
 0x156   :  { %2178 = vmatprep.subr.bf16.mxu0 %v5292_v17  ;;  %v5394_v16 = vld [vmem:[#allocation7 + $0x1e4] ss:$20 sps:$4 sm:$0xff]  }
 0x157   :  { %v5350_v17 = vld [vmem:[#allocation3 + $0x850] ss:$24 sps:$4 sm:$0xff]  }
 0x158   :  { %2097 = vmatpush1.bf16.msra.mxu1 %v5287_v19  ;;  %v5358_v19 = vld [vmem:[#allocation3 + $0x884] ss:$24 sps:$4 sm:$0xff]  }
 0x159   :  { %2179 = vmatpush1.bf16.msra.mxu0 %v5290_v20  ;;  %2098 = vmatprep.subr.bf16.mxu1 %v5295_v21  ;;  %v5392_v20 = vld [vmem:[#allocation7 + $0x1e0] ss:$20 sps:$4 sm:$0xff]  }
 0x15a   :  { %2180 = vmatprep.subr.bf16.mxu0 %v5298_v22  ;;  %v5400_v21 = vld [vmem:[#allocation7 + $0x20c] ss:$20 sps:$4 sm:$0xff]   ;;  %v5356_v22 = vld [vmem:[#allocation3 + $0x880] ss:$24 sps:$4 sm:$0xff]  }
 0x15c   :  { %2099 = vmatpush1.bf16.msra.mxu1 %v5293_v23  ;;  %v5364_v23 = vld [vmem:[#allocation3 + $0x8b4] ss:$24 sps:$4 sm:$0xff]  }
 0x15d   :  { %2181 = vmatpush1.bf16.msra.mxu0 %v5296_v24  ;;  %3807 = vmatprep.subr.bf16.mxu1 %v5325_v26  ;;  %v5398_v24 = vld [vmem:[#allocation7 + $0x208] ss:$20 sps:$4 sm:$0xff]  }
 0x15e   :  { %2191 = vmatprep.subr.bf16.mxu0 %v5301_v25  ;;  %v5406_v25 = vld [vmem:[#allocation7 + $0x234] ss:$20 sps:$4 sm:$0xff]  }
 0x15f   :  { %2101 = vmatmul.mubr.bf16.vlgmr.msra.gmra.mrb[4].mxu1 %v5949_v18  ;;  %v5362_v26 = vld [vmem:[#allocation3 + $0x8b0] ss:$24 sps:$4 sm:$0xff]  }
 0x160   :  { %2183 = vmatmul.mubr.bf16.vlgmr.msra.gmra.mrb[4].mxu0 %v5935_v12  ;;  %3808 = vmatpush1.bf16.msra.mxu1 %v5323_v28  ;;  %v5308_v12 = vld [vmem:[#allocation3 + $0x6a0] ss:$24 sps:$4 sm:$0xff]   ;;  %v5370_v28 = vld [vmem:[#allocation3 + $0x8e4] ss:$24 sps:$4 sm:$0xff]  }
 0x161   :  { %2192 = vmatpush1.bf16.msra.mxu0 %v5299_v27  ;;  %3809 = vmatprep.subr.bf16.mxu1 %v5331_v30  ;;  %v5404_v27 = vld [vmem:[#allocation7 + $0x230] ss:$20 sps:$4 sm:$0xff]  }
 0x162   :  { %2193 = vmatprep.subr.bf16.mxu0 %v5304_v29  ;;  %2223 = vmatprep.mubr.bf16.mxu0 %v5943_v36  ;;  %v5347_v36 = vld [vmem:[#allocation7 + $0xa0] ss:$20 sps:$4 sm:$0xff]   ;;  %v5412_v29 = vld [vmem:[#allocation7 + $0x25c] ss:$20 sps:$4 sm:$0xff]  }
 0x163   :  { %v5368_v30 = vld [vmem:[#allocation3 + $0x8e0] ss:$24 sps:$4 sm:$0xff]  }
 0x164   :  { %3810 = vmatpush1.bf16.msra.mxu1 %v5329_v32  ;;  %v5379_v32 = vld [vmem:[#allocation7 + $0xc] ss:$20 sps:$4 sm:$0xff]  }
 0x165   :  { %2194 = vmatpush1.bf16.msra.mxu0 %v5302_v31  ;;  %3811 = vmatprep.subr.bf16.mxu1 %v5337_v34  ;;  %v5410_v31 = vld [vmem:[#allocation7 + $0x258] ss:$20 sps:$4 sm:$0xff]   ;;  %v5377_v34 = vld [vmem:[#allocation7 + $0x8] ss:$20 sps:$4 sm:$0xff]  }
 0x166   :  { %2195 = vmatprep.subr.bf16.mxu0 %v5307_v33  ;;  %v5445_v33 = vld [vmem:[#allocation7 + $0x284] ss:$20 sps:$4 sm:$0xff]  }
 0x168   :  { %3812 = vmatpush1.bf16.msra.mxu1 %v5335_v49  ;;  %v5391_v49 = vld [vmem:[#allocation7 + $0x5c] ss:$20 sps:$4 sm:$0xff]  }
 0x169   :  { %2196 = vmatpush1.bf16.msra.mxu0 %v5305_v9  ;;  %3813 = vmatprep.subr.bf16.mxu1 %v5343_v37  ;;  %v5385_v9 = vld [vmem:[#allocation7 + $0x34] ss:$20 sps:$4 sm:$0xff]   ;;  %v5389_v37 = vld [vmem:[#allocation7 + $0x58] ss:$20 sps:$4 sm:$0xff]  }
 0x16a   :  { %2197 = vmatprep.subr.bf16.mxu0 %v5310_v35  ;;  %v5383_v35 = vld [vmem:[#allocation7 + $0x30] ss:$20 sps:$4 sm:$0xff]  }
 0x16c   :  { %3814 = vmatpush1.bf16.msra.mxu1 %v5341_v39  ;;  %v5970_v39 = vsub.s32 0, %v5966_v2 }
 0x16d   :  { %2198 = vmatpush1.bf16.msra.mxu0 %v5308_v12  ;;  %3815 = vmatprep.subr.bf16.mxu1 %v5349_v53  ;;  %v5397_v12 = vld [vmem:[#allocation7 + $0x84] ss:$20 sps:$4 sm:$0xff]   ;;  %v5403_v53 = vld [vmem:[#allocation7 + $0xac] ss:$20 sps:$4 sm:$0xff]  }
 0x16e   :  { %2199 = vmatprep.subr.bf16.mxu0 %v5313_v38  ;;  %v5395_v38 = vld [vmem:[#allocation7 + $0x80] ss:$20 sps:$4 sm:$0xff]  }
 0x170   :  { %3816 = vmatpush1.bf16.msra.mxu1 %v5347_v36 }
 0x171   :  { %2200 = vmatpush1.bf16.msra.mxu0 %v5311_v40  ;;  %3817 = vmatprep.subr.bf16.mxu1 %v5355_v42  ;;  %v5972_v40 = vld [vmem:[#allocation5] sm:$0x3f]  ;;  %v5409_v42 = vld [vmem:[#allocation7 + $0xd4] ss:$20 sps:$4 sm:$0xff]  }
 0x172   :  { %2201 = vmatprep.subr.bf16.mxu0 %v5316_v41  ;;  %v5962_v47 = vpop.f32.mrb[0].mxu1  ;;  %v399_v41 = vsub.s32 1, %v5966_v2  ;;  %v396_v36 = vrot.slane %v5972_v40, %v5970_v39 }
 0x173   :  { %v5964_v48 = vpop.f32.mrb[1].mxu1 }
 0x174   :  { %v1901_v50 = vpop.f32.mrb[2].mxu1  ;;  %3818 = vmatpush1.bf16.msra.mxu1 %v5353_v45  ;;  %v1898_v45 = vadd.f32 %v5962_v47, %v396_v36  ;;  %v5416_v47 = vld [vmem:[#allocation7 + $0x120] ss:$20 sps:$4 sm:$0xff]   ;;  %v5503_v36 = vld [vmem:[#allocation7 + $0x410] ss:$20 sps:$4 sm:$0xff]  }
 0x175   :  { %2202 = vmatpush1.bf16.msra.mxu0 %v5314_v43  ;;  %v1902_v54 = vpop.f32.mrb[3].mxu1  ;;  %3819 = vmatprep.subr.bf16.mxu1 %v5361_v46  ;;  %v400_v43 = vrot.slane %v5972_v40, %v399_v41  ;;  %v5415_v46 = vld [vmem:[#allocation7 + $0xfc] ss:$20 sps:$4 sm:$0xff]  }
 0x176   :  { %2203 = vmatprep.subr.bf16.mxu0 %v5319_v44  ;;  %v5407_v44 = vld [vmem:[#allocation7 + $0xd0] ss:$20 sps:$4 sm:$0xff]  }
 0x177   :  { %v1900_v50 = vadd.f32 %v5964_v48, %v400_v43  ;;  %v5421_v48 = vld [vmem:[#allocation7 + $0x14c] ss:$20 sps:$4 sm:$0xff]   ;;  %v5511_v43 = vld [vmem:[#allocation7 + $0x43c] ss:$20 sps:$4 sm:$0xff]  }
 0x178   :  { %3820 = vmatpush1.bf16.msra.mxu1 %v5359_v52 }
 0x179   :  { %2204 = vmatpush1.bf16.msra.mxu0 %v5317_v51  ;;  %3821 = vmatprep.subr.bf16.mxu1 %v5367_v56 }
 0x17a   :  { %2205 = vmatprep.subr.bf16.mxu0 %v5322_v55 }
 0x17c   :  { %3822 = vmatpush1.bf16.msra.mxu1 %v5365_v59 }
 0x17d   :  { %2206 = vmatpush1.bf16.msra.mxu0 %v5320_v57  ;;  %3823 = vmatprep.subr.bf16.mxu1 %v5373_v60  ;;  %v5413_v57 = vld [vmem:[#allocation7 + $0xf8] ss:$20 sps:$4 sm:$0xff]  }
 0x17e   :  { %2207 = vmatprep.subr.bf16.mxu0 %v5328_v58  ;;  %v5418_v60 = vld [vmem:[#allocation7 + $0x124] ss:$20 sps:$4 sm:$0xff]  }
 0x180   :  { %3824 = vmatpush1.bf16.msra.mxu1 %v5371_v0 }
 0x181   :  { %2208 = vmatpush1.bf16.msra.mxu0 %v5326_v62  ;;  %3825 = vmatprep.subr.bf16.mxu1 %v5376_v1  ;;  %v5451_v1 = vld [vmem:[#allocation7 + $0x2ac] ss:$20 sps:$4 sm:$0xff]  }
 0x182   :  { %2209 = vmatprep.subr.bf16.mxu0 %v5334_v63  ;;  %v5443_v63 = vld [vmem:[#allocation7 + $0x280] ss:$20 sps:$4 sm:$0xff]  }
 0x184   :  { %3826 = vmatpush1.bf16.msra.mxu1 %v5374_v5  ;;  %v5424_v5 = vld [vmem:[#allocation7 + $0x174] ss:$20 sps:$4 sm:$0xff]  }
 0x185   :  { %2210 = vmatpush1.bf16.msra.mxu0 %v5332_v3  ;;  %3827 = vmatprep.subr.bf16.mxu1 %v5382_v6  ;;  %v5419_v3 = vld [vmem:[#allocation7 + $0x148] ss:$20 sps:$4 sm:$0xff]  }
 0x186   :  { %2211 = vmatprep.subr.bf16.mxu0 %v5340_v4  ;;  %v5449_v4 = vld [vmem:[#allocation7 + $0x2a8] ss:$20 sps:$4 sm:$0xff]  }
 0x187   :  { %v5457_v6 = vld [vmem:[#allocation7 + $0x2d4] ss:$20 sps:$4 sm:$0xff]  }
 0x188   :  { %3828 = vmatpush1.bf16.msra.mxu1 %v5380_v10  ;;  %v5427_v10 = vld [vmem:[#allocation7 + $0x19c] ss:$20 sps:$4 sm:$0xff]  }
 0x189   :  { %2212 = vmatpush1.bf16.msra.mxu0 %v5338_v7  ;;  %3829 = vmatprep.subr.bf16.mxu1 %v5388_v11  ;;  %v5422_v7 = vld [vmem:[#allocation7 + $0x170] ss:$20 sps:$4 sm:$0xff]  }
 0x18a   :  { %2213 = vmatprep.subr.bf16.mxu0 %v5346_v8  ;;  %v5455_v8 = vld [vmem:[#allocation7 + $0x2d0] ss:$20 sps:$4 sm:$0xff]  }
 0x18b   :  { %v5463_v11 = vld [vmem:[#allocation7 + $0x2fc] ss:$20 sps:$4 sm:$0xff]  }
 0x18c   :  { %3830 = vmatpush1.bf16.msra.mxu1 %v5386_v15  ;;  %v5430_v15 = vld [vmem:[#allocation7 + $0x1c4] ss:$20 sps:$4 sm:$0xff]  }
 0x18d   :  { %2214 = vmatpush1.bf16.msra.mxu0 %v5344_v13  ;;  %3831 = vmatprep.subr.bf16.mxu1 %v5394_v16  ;;  %v5425_v13 = vld [vmem:[#allocation7 + $0x198] ss:$20 sps:$4 sm:$0xff]  }
 0x18e   :  { %2215 = vmatprep.subr.bf16.mxu0 %v5352_v14  ;;  %v5461_v14 = vld [vmem:[#allocation7 + $0x2f8] ss:$20 sps:$4 sm:$0xff]  }
 0x18f   :  { %v5469_v16 = vld [vmem:[#allocation7 + $0x324] ss:$20 sps:$4 sm:$0xff]  }
 0x190   :  { %3832 = vmatpush1.bf16.msra.mxu1 %v5392_v20  ;;  %v5433_v20 = vld [vmem:[#allocation7 + $0x1ec] ss:$20 sps:$4 sm:$0xff]  }
 0x191   :  { %2216 = vmatpush1.bf16.msra.mxu0 %v5350_v17  ;;  %3833 = vmatprep.subr.bf16.mxu1 %v5400_v21  ;;  %v5428_v17 = vld [vmem:[#allocation7 + $0x1c0] ss:$20 sps:$4 sm:$0xff]  }
 0x192   :  { %2217 = vmatprep.subr.bf16.mxu0 %v5358_v19  ;;  %v5467_v19 = vld [vmem:[#allocation7 + $0x320] ss:$20 sps:$4 sm:$0xff]  }
 0x193   :  { %v5475_v21 = vld [vmem:[#allocation7 + $0x34c] ss:$20 sps:$4 sm:$0xff]  }
 0x194   :  { %3834 = vmatpush1.bf16.msra.mxu1 %v5398_v24  ;;  %v5436_v24 = vld [vmem:[#allocation7 + $0x214] ss:$20 sps:$4 sm:$0xff]  }
 0x195   :  { %2218 = vmatpush1.bf16.msra.mxu0 %v5356_v22  ;;  %3835 = vmatprep.subr.bf16.mxu1 %v5406_v25  ;;  %v5431_v22 = vld [vmem:[#allocation7 + $0x1e8] ss:$20 sps:$4 sm:$0xff]  }
 0x196   :  { %2219 = vmatprep.subr.bf16.mxu0 %v5364_v23  ;;  %v5473_v23 = vld [vmem:[#allocation7 + $0x348] ss:$20 sps:$4 sm:$0xff]  }
 0x197   :  { %v5481_v25 = vld [vmem:[#allocation7 + $0x374] ss:$20 sps:$4 sm:$0xff]  }
 0x198   :  { %3836 = vmatpush1.bf16.msra.mxu1 %v5404_v27  ;;  %v5479_v27 = vld [vmem:[#allocation7 + $0x370] ss:$20 sps:$4 sm:$0xff]  }
 0x199   :  { %2220 = vmatpush1.bf16.msra.mxu0 %v5362_v26  ;;  %3837 = vmatprep.subr.bf16.mxu1 %v5412_v29  ;;  %v5434_v26 = vld [vmem:[#allocation7 + $0x210] ss:$20 sps:$4 sm:$0xff]  }
 0x19a   :  { %2221 = vmatprep.subr.bf16.mxu0 %v5370_v28  ;;  %v5439_v28 = vld [vmem:[#allocation7 + $0x23c] ss:$20 sps:$4 sm:$0xff]  }
 0x19b   :  { %v5487_v29 = vld [vmem:[#allocation7 + $0x39c] ss:$20 sps:$4 sm:$0xff]  }
 0x19c   :  { %3838 = vmatpush1.bf16.msra.mxu1 %v5410_v31  ;;  %v5485_v31 = vld [vmem:[#allocation7 + $0x398] ss:$20 sps:$4 sm:$0xff]  }
 0x19d   :  { %2222 = vmatpush1.bf16.msra.mxu0 %v5368_v30  ;;  %3848 = vmatprep.subr.bf16.mxu1 %v5445_v33  ;;  %v5437_v30 = vld [vmem:[#allocation7 + $0x238] ss:$20 sps:$4 sm:$0xff]  }
 0x19e   :  { %3930 = vmatprep.subr.bf16.mxu0 %v5379_v32  ;;  %v5442_v32 = vld [vmem:[#allocation7 + $0x264] ss:$20 sps:$4 sm:$0xff]  }
 0x19f   :  { %v5493_v33 = vld [vmem:[#allocation7 + $0x3c4] ss:$20 sps:$4 sm:$0xff]  }
 0x1a0   :  { %2224 = vmatmul.mubr.bf16.vlgmr.msra.gmra.mrb[4].mxu0 %v5949_v18  ;;  %v5401_v18 = vld [vmem:[#allocation7 + $0xa8] ss:$20 sps:$4 sm:$0xff]  }
 0x1a1   :  { %3931 = vmatpush1.bf16.msra.mxu0 %v5377_v34  ;;  %v5440_v34 = vld [vmem:[#allocation7 + $0x260] ss:$20 sps:$4 sm:$0xff]  }
 0x1a2   :  { %3932 = vmatprep.subr.bf16.mxu0 %v5385_v9  ;;  %v5491_v9 = vld [vmem:[#allocation7 + $0x3c0] ss:$20 sps:$4 sm:$0xff]  }
 0x1a5   :  { %3933 = vmatpush1.bf16.msra.mxu0 %v5383_v35  ;;  %v5448_v35 = vld [vmem:[#allocation7 + $0x28c] ss:$20 sps:$4 sm:$0xff]  }
 0x1a6   :  { %3934 = vmatprep.subr.bf16.mxu0 %v5391_v49  ;;  %v5499_v49 = vld [vmem:[#allocation7 + $0x3ec] ss:$20 sps:$4 sm:$0xff]  }
 0x1a9   :  { %3935 = vmatpush1.bf16.msra.mxu0 %v5389_v37  ;;  %v5446_v37 = vld [vmem:[#allocation7 + $0x288] ss:$20 sps:$4 sm:$0xff]  }
 0x1aa   :  { %3936 = vmatprep.subr.bf16.mxu0 %v5397_v12  ;;  %v5497_v12 = vld [vmem:[#allocation7 + $0x3e8] ss:$20 sps:$4 sm:$0xff]  }
 0x1ad   :  { %3937 = vmatpush1.bf16.msra.mxu0 %v5395_v38  ;;  %v5454_v38 = vld [vmem:[#allocation7 + $0x2b4] ss:$20 sps:$4 sm:$0xff]  }
 0x1ae   :  { %3938 = vmatprep.subr.bf16.mxu0 %v5403_v53  ;;  %v5505_v53 = vld [vmem:[#allocation7 + $0x414] ss:$20 sps:$4 sm:$0xff]  }
 0x1b1   :  { %3939 = vmatpush1.bf16.msra.mxu0 %v5401_v18  ;;  %v5452_v18 = vld [vmem:[#allocation7 + $0x2b0] ss:$20 sps:$4 sm:$0xff]  }
 0x1b2   :  { %3940 = vmatprep.subr.bf16.mxu0 %v5409_v42  ;;  %v5460_v42 = vld [vmem:[#allocation7 + $0x2dc] ss:$20 sps:$4 sm:$0xff]  }
 0x1b3   :  { %v1979_v51 = vpop.f32.mrb[0].mxu0 }
 0x1b4   :  { %v4859_v52 = vadd.f32 %v1979_v51, %v1898_v45  ;;  %v1981_v54 = vpop.f32.mrb[1].mxu0  ;;  %v5509_v45 = vld [vmem:[#allocation7 + $0x438] ss:$20 sps:$4 sm:$0xff]   ;;  %v5464_v51 = vld [vmem:[#allocation7 + $0x300] ss:$20 sps:$4 sm:$0xff]  }
 0x1b5   :  { %v4861_v55 = vadd.f32 %v1981_v54, %v1900_v50  ;;  %v1983_v56 = vpop.f32.mrb[2].mxu0  ;;  %3941 = vmatpush1.bf16.msra.mxu0 %v5407_v44  ;;  %v5458_v44 = vld [vmem:[#allocation7 + $0x2d8] ss:$20 sps:$4 sm:$0xff]  }
 0x1b6   :  { %v2232_v58 = vmax.f32 %v4859_v52, 0.0  ;;  %v1984_v59 = vpop.f32.mrb[3].mxu0  ;;  %3942 = vmatprep.subr.bf16.mxu0 %v5415_v46  ;;  %v5466_v46 = vld [vmem:[#allocation7 + $0x304] ss:$20 sps:$4 sm:$0xff]   ;;  %v5515_v52 = vld [vmem:[#allocation7 + $0x460] ss:$20 sps:$4 sm:$0xff]  }
 0x1b7   :  { %v2233_v61 = vmax.f32 %v4861_v55, 0.0  ;;  %v5517_v50 = vld [vmem:[#allocation7 + $0x464] ss:$20 sps:$4 sm:$0xff]   ;;  %v5472_v54 = vld [vmem:[#allocation7 + $0x32c] ss:$20 sps:$4 sm:$0xff]  }
 0x1b8   :  { %v5984_v0 = vpack.c.bf16 %v2232_v58, %v2232_v58  ;;  %v5523_v55 = vld [vmem:[#allocation7 + $0x48c] ss:$20 sps:$4 sm:$0xff]   ;;  %v5470_v56 = vld [vmem:[#allocation7 + $0x328] ss:$20 sps:$4 sm:$0xff]  }
 0x1b9   :  { %v5982_v62 = vpack.c.bf16 %v2233_v61, %v2233_v61  ;;  %3943 = vmatpush1.bf16.msra.mxu0 %v5413_v57  ;;  %v5521_v57 = vld [vmem:[#allocation7 + $0x488] ss:$20 sps:$4 sm:$0xff]   ;;  %v5527_v61 = vld [vmem:[#allocation7 + $0x4b0] ss:$20 sps:$4 sm:$0xff]  }
 0x1ba   :  { %3944 = vmatprep.subr.bf16.mxu0 %v5418_v60  ;;  %v5478_v58 = vld [vmem:[#allocation7 + $0x354] ss:$20 sps:$4 sm:$0xff]   ;;  %v5476_v60 = vld [vmem:[#allocation7 + $0x350] ss:$20 sps:$4 sm:$0xff]  }
 0x1bb   :  { %3839 = vmatprep.mubr.bf16.mxu1 %v5982_v62  ;;  %3962 = vmatprep.mubr.bf16.mxu0 %v5982_v62  ;;  %v5529_v59 = vld [vmem:[#allocation7 + $0x4b4] ss:$20 sps:$4 sm:$0xff]  }
 0x1bc   :  { %3840 = vmatmul.mubr.bf16.vlgmr.msra.gmra.mrb[8].mxu1 %v5984_v0 }
 0x1bd   :  { %3945 = vmatpush1.bf16.msra.mxu0 %v5416_v47  ;;  %3849 = vmatpush1.bf16.msra.mxu1 %v5443_v63  ;;  %v5484_v47 = vld [vmem:[#allocation7 + $0x37c] ss:$20 sps:$4 sm:$0xff]  }
 0x1be   :  { %3946 = vmatprep.subr.bf16.mxu0 %v5421_v48  ;;  %3850 = vmatprep.subr.bf16.mxu1 %v5451_v1  ;;  %v5535_v63 = vld [vmem:[#allocation7 + $0x4dc] ss:$20 sps:$4 sm:$0xff]   ;;  %v5482_v48 = vld [vmem:[#allocation7 + $0x378] ss:$20 sps:$4 sm:$0xff]  }
 0x1bf   :  { %v5533_v1 = vld [vmem:[#allocation7 + $0x4d8] ss:$20 sps:$4 sm:$0xff]  }
 0x1c1   :  { %3947 = vmatpush1.bf16.msra.mxu0 %v5419_v3  ;;  %3851 = vmatpush1.bf16.msra.mxu1 %v5449_v4  ;;  %v5490_v3 = vld [vmem:[#allocation7 + $0x3a4] ss:$20 sps:$4 sm:$0xff]  }
 0x1c2   :  { %3948 = vmatprep.subr.bf16.mxu0 %v5424_v5  ;;  %3852 = vmatprep.subr.bf16.mxu1 %v5457_v6  ;;  %v5541_v4 = vld [vmem:[#allocation7 + $0x504] ss:$20 sps:$4 sm:$0xff]   ;;  %v5488_v5 = vld [vmem:[#allocation7 + $0x3a0] ss:$20 sps:$4 sm:$0xff]  }
 0x1c3   :  { %v5496_v6 = vld [vmem:[#allocation7 + $0x3cc] ss:$20 sps:$4 sm:$0xff]  }
 0x1c5   :  { %3949 = vmatpush1.bf16.msra.mxu0 %v5422_v7  ;;  %3853 = vmatpush1.bf16.msra.mxu1 %v5455_v8  ;;  %v5494_v7 = vld [vmem:[#allocation7 + $0x3c8] ss:$20 sps:$4 sm:$0xff]  }
 0x1c6   :  { %3950 = vmatprep.subr.bf16.mxu0 %v5427_v10  ;;  %3854 = vmatprep.subr.bf16.mxu1 %v5463_v11  ;;  %v5502_v8 = vld [vmem:[#allocation7 + $0x3f4] ss:$20 sps:$4 sm:$0xff]   ;;  %v5500_v10 = vld [vmem:[#allocation7 + $0x3f0] ss:$20 sps:$4 sm:$0xff]  }
 0x1c7   :  { %v5508_v11 = vld [vmem:[#allocation7 + $0x41c] ss:$20 sps:$4 sm:$0xff]  }
 0x1c9   :  { %3951 = vmatpush1.bf16.msra.mxu0 %v5425_v13  ;;  %3855 = vmatpush1.bf16.msra.mxu1 %v5461_v14  ;;  %v5506_v13 = vld [vmem:[#allocation7 + $0x418] ss:$20 sps:$4 sm:$0xff]  }
 0x1ca   :  { %3952 = vmatprep.subr.bf16.mxu0 %v5430_v15  ;;  %3856 = vmatprep.subr.bf16.mxu1 %v5469_v16  ;;  %v5514_v14 = vld [vmem:[#allocation7 + $0x444] ss:$20 sps:$4 sm:$0xff]   ;;  %v5512_v15 = vld [vmem:[#allocation7 + $0x440] ss:$20 sps:$4 sm:$0xff]  }
 0x1cb   :  { %v5520_v16 = vld [vmem:[#allocation7 + $0x46c] ss:$20 sps:$4 sm:$0xff]  }
 0x1cd   :  { %3953 = vmatpush1.bf16.msra.mxu0 %v5428_v17  ;;  %3857 = vmatpush1.bf16.msra.mxu1 %v5467_v19  ;;  %v5518_v17 = vld [vmem:[#allocation7 + $0x468] ss:$20 sps:$4 sm:$0xff]  }
 0x1ce   :  { %3954 = vmatprep.subr.bf16.mxu0 %v5433_v20  ;;  %3858 = vmatprep.subr.bf16.mxu1 %v5475_v21  ;;  %v5526_v19 = vld [vmem:[#allocation7 + $0x494] ss:$20 sps:$4 sm:$0xff]   ;;  %v5524_v20 = vld [vmem:[#allocation7 + $0x490] ss:$20 sps:$4 sm:$0xff]  }
 0x1cf   :  { %v5532_v21 = vld [vmem:[#allocation7 + $0x4bc] ss:$20 sps:$4 sm:$0xff]  }
 0x1d1   :  { %3955 = vmatpush1.bf16.msra.mxu0 %v5431_v22  ;;  %3859 = vmatpush1.bf16.msra.mxu1 %v5473_v23  ;;  %v5530_v22 = vld [vmem:[#allocation7 + $0x4b8] ss:$20 sps:$4 sm:$0xff]  }
 0x1d2   :  { %3956 = vmatprep.subr.bf16.mxu0 %v5436_v24  ;;  %3860 = vmatprep.subr.bf16.mxu1 %v5481_v25  ;;  %v5538_v23 = vld [vmem:[#allocation7 + $0x4e4] ss:$20 sps:$4 sm:$0xff]   ;;  %v5536_v24 = vld [vmem:[#allocation7 + $0x4e0] ss:$20 sps:$4 sm:$0xff]  }
 0x1d3   :  { %v5544_v25 = vld [vmem:[#allocation7 + $0x50c] ss:$20 sps:$4 sm:$0xff]  }
 0x1d5   :  { %3957 = vmatpush1.bf16.msra.mxu0 %v5434_v26  ;;  %3861 = vmatpush1.bf16.msra.mxu1 %v5479_v27  ;;  %v5991_v26 = vsub.s32 2, %v5966_v2  ;;  %v407_v27 = vsub.s32 3, %v5966_v2 }
 0x1d6   :  { %3958 = vmatprep.subr.bf16.mxu0 %v5439_v28  ;;  %3862 = vmatprep.subr.bf16.mxu1 %v5487_v29 }
 0x1d7   :  { %v404_v28 = vrot.slane %v5972_v40, %v5991_v26  ;;  %v408_v29 = vrot.slane %v5972_v40, %v407_v27 }
 0x1d9   :  { %3959 = vmatpush1.bf16.msra.mxu0 %v5437_v30  ;;  %3863 = vmatpush1.bf16.msra.mxu1 %v5485_v31 }
 0x1da   :  { %3960 = vmatprep.subr.bf16.mxu0 %v5442_v32  ;;  %3864 = vmatprep.subr.bf16.mxu1 %v5493_v33 }
 0x1dd   :  { %3961 = vmatpush1.bf16.msra.mxu0 %v5440_v34  ;;  %3865 = vmatpush1.bf16.msra.mxu1 %v5491_v9 }
 0x1de   :  { %3971 = vmatprep.subr.bf16.mxu0 %v5448_v35  ;;  %3866 = vmatprep.subr.bf16.mxu1 %v5499_v49 }
 0x1e0   :  { %3963 = vmatmul.mubr.bf16.vlgmr.msra.gmra.mrb[8].mxu0 %v5984_v0 }
 0x1e1   :  { %3972 = vmatpush1.bf16.msra.mxu0 %v5446_v37  ;;  %3867 = vmatpush1.bf16.msra.mxu1 %v5497_v12  ;;  %v5539_v12 = vld [vmem:[#allocation7 + $0x500] ss:$20 sps:$4 sm:$0xff]  }
 0x1e2   :  { %3973 = vmatprep.subr.bf16.mxu0 %v5454_v38  ;;  %3868 = vmatprep.subr.bf16.mxu1 %v5505_v53  ;;  %v5542_v38 = vld [vmem:[#allocation7 + $0x508] ss:$20 sps:$4 sm:$0xff]  }
 0x1e5   :  { %3974 = vmatpush1.bf16.msra.mxu0 %v5452_v18  ;;  %3869 = vmatpush1.bf16.msra.mxu1 %v5503_v36  ;;  %v5547_v18 = vld [vmem:[#allocation7 + $0x52c] ss:$20 sps:$4 sm:$0xff]   ;;  %v5550_v36 = vld [vmem:[#allocation7 + $0x534] ss:$20 sps:$4 sm:$0xff]  }
 0x1e6   :  { %3975 = vmatprep.subr.bf16.mxu0 %v5460_v42  ;;  %3870 = vmatprep.subr.bf16.mxu1 %v5511_v43  ;;  %v5545_v42 = vld [vmem:[#allocation7 + $0x528] ss:$20 sps:$4 sm:$0xff]   ;;  %v5548_v43 = vld [vmem:[#allocation7 + $0x530] ss:$20 sps:$4 sm:$0xff]  }
 0x1e9   :  { %3976 = vmatpush1.bf16.msra.mxu0 %v5458_v44  ;;  %3871 = vmatpush1.bf16.msra.mxu1 %v5509_v45  ;;  %v5553_v44 = vld [vmem:[#allocation7 + $0x554] ss:$20 sps:$4 sm:$0xff]   ;;  %v5556_v45 = vld [vmem:[#allocation7 + $0x55c] ss:$20 sps:$4 sm:$0xff]  }
 0x1ea   :  { %3977 = vmatprep.subr.bf16.mxu0 %v5466_v46  ;;  %3872 = vmatprep.subr.bf16.mxu1 %v5517_v50  ;;  %v5551_v46 = vld [vmem:[#allocation7 + $0x550] ss:$20 sps:$4 sm:$0xff]   ;;  %v5554_v50 = vld [vmem:[#allocation7 + $0x558] ss:$20 sps:$4 sm:$0xff]  }
 0x1ed   :  { %3978 = vmatpush1.bf16.msra.mxu0 %v5464_v51  ;;  %3873 = vmatpush1.bf16.msra.mxu1 %v5515_v52  ;;  %v5559_v51 = vld [vmem:[#allocation7 + $0x57c] ss:$20 sps:$4 sm:$0xff]   ;;  %v5562_v52 = vld [vmem:[#allocation7 + $0x584] ss:$20 sps:$4 sm:$0xff]  }
 0x1ee   :  { %3979 = vmatprep.subr.bf16.mxu0 %v5472_v54  ;;  %3874 = vmatprep.subr.bf16.mxu1 %v5523_v55  ;;  %v5557_v54 = vld [vmem:[#allocation7 + $0x578] ss:$20 sps:$4 sm:$0xff]   ;;  %v5560_v55 = vld [vmem:[#allocation7 + $0x580] ss:$20 sps:$4 sm:$0xff]  }
 0x1f1   :  { %3980 = vmatpush1.bf16.msra.mxu0 %v5470_v56  ;;  %3875 = vmatpush1.bf16.msra.mxu1 %v5521_v57  ;;  %v5565_v56 = vld [vmem:[#allocation7 + $0x5a4] ss:$20 sps:$4 sm:$0xff]   ;;  %v5568_v57 = vld [vmem:[#allocation7 + $0x5ac] ss:$20 sps:$4 sm:$0xff]  }
 0x1f2   :  { %3981 = vmatprep.subr.bf16.mxu0 %v5478_v58  ;;  %3876 = vmatprep.subr.bf16.mxu1 %v5529_v59  ;;  %v5563_v58 = vld [vmem:[#allocation7 + $0x5a0] ss:$20 sps:$4 sm:$0xff]   ;;  %v5566_v59 = vld [vmem:[#allocation7 + $0x5a8] ss:$20 sps:$4 sm:$0xff]  }
 0x1f5   :  { %3982 = vmatpush1.bf16.msra.mxu0 %v5476_v60  ;;  %3877 = vmatpush1.bf16.msra.mxu1 %v5527_v61  ;;  %v5571_v60 = vld [vmem:[#allocation7 + $0x5cc] ss:$20 sps:$4 sm:$0xff]   ;;  %v5574_v61 = vld [vmem:[#allocation7 + $0x5d4] ss:$20 sps:$4 sm:$0xff]  }
 0x1f6   :  { %3983 = vmatprep.subr.bf16.mxu0 %v5484_v47  ;;  %3878 = vmatprep.subr.bf16.mxu1 %v5535_v63  ;;  %v5569_v47 = vld [vmem:[#allocation7 + $0x5c8] ss:$20 sps:$4 sm:$0xff]   ;;  %v5572_v63 = vld [vmem:[#allocation7 + $0x5d0] ss:$20 sps:$4 sm:$0xff]  }
 0x1f9   :  { %3984 = vmatpush1.bf16.msra.mxu0 %v5482_v48  ;;  %3879 = vmatpush1.bf16.msra.mxu1 %v5533_v1  ;;  %v5577_v48 = vld [vmem:[#allocation7 + $0x5f4] ss:$20 sps:$4 sm:$0xff]   ;;  %v5580_v1 = vld [vmem:[#allocation7 + $0x5fc] ss:$20 sps:$4 sm:$0xff]  }
 0x1fa   :  { %3985 = vmatprep.subr.bf16.mxu0 %v5490_v3  ;;  %3889 = vmatprep.subr.bf16.mxu1 %v5541_v4  ;;  %v5575_v3 = vld [vmem:[#allocation7 + $0x5f0] ss:$20 sps:$4 sm:$0xff]   ;;  %v5578_v4 = vld [vmem:[#allocation7 + $0x5f8] ss:$20 sps:$4 sm:$0xff]  }
 0x1fd   :  { %3986 = vmatpush1.bf16.msra.mxu0 %v5488_v5  ;;  %v5583_v5 = vld [vmem:[#allocation7 + $0x61c] ss:$20 sps:$4 sm:$0xff]  }
 0x1fe   :  { %3987 = vmatprep.subr.bf16.mxu0 %v5496_v6  ;;  %v5586_v6 = vld [vmem:[#allocation7 + $0x624] ss:$20 sps:$4 sm:$0xff]  }
 0x201   :  { %3988 = vmatpush1.bf16.msra.mxu0 %v5494_v7  ;;  %v5581_v7 = vld [vmem:[#allocation7 + $0x618] ss:$20 sps:$4 sm:$0xff]  }
 0x202   :  { %3989 = vmatprep.subr.bf16.mxu0 %v5502_v8  ;;  %v5584_v8 = vld [vmem:[#allocation7 + $0x620] ss:$20 sps:$4 sm:$0xff]  }
 0x205   :  { %3990 = vmatpush1.bf16.msra.mxu0 %v5500_v10  ;;  %v5589_v10 = vld [vmem:[#allocation7 + $0x644] ss:$20 sps:$4 sm:$0xff]  }
 0x206   :  { %3991 = vmatprep.subr.bf16.mxu0 %v5508_v11  ;;  %v5592_v11 = vld [vmem:[#allocation7 + $0x64c] ss:$20 sps:$4 sm:$0xff]  }
 0x209   :  { %3992 = vmatpush1.bf16.msra.mxu0 %v5506_v13  ;;  %v5587_v13 = vld [vmem:[#allocation7 + $0x640] ss:$20 sps:$4 sm:$0xff]  }
 0x20a   :  { %3993 = vmatprep.subr.bf16.mxu0 %v5514_v14  ;;  %v5590_v14 = vld [vmem:[#allocation7 + $0x648] ss:$20 sps:$4 sm:$0xff]  }
 0x20d   :  { %3994 = vmatpush1.bf16.msra.mxu0 %v5512_v15  ;;  %v5595_v15 = vld [vmem:[#allocation7 + $0x66c] ss:$20 sps:$4 sm:$0xff]  }
 0x20e   :  { %3995 = vmatprep.subr.bf16.mxu0 %v5520_v16  ;;  %v5598_v16 = vld [vmem:[#allocation7 + $0x674] ss:$20 sps:$4 sm:$0xff]  }
 0x211   :  { %3996 = vmatpush1.bf16.msra.mxu0 %v5518_v17  ;;  %v5593_v17 = vld [vmem:[#allocation7 + $0x668] ss:$20 sps:$4 sm:$0xff]  }
 0x212   :  { %3997 = vmatprep.subr.bf16.mxu0 %v5526_v19  ;;  %v5596_v19 = vld [vmem:[#allocation7 + $0x670] ss:$20 sps:$4 sm:$0xff]  }
 0x215   :  { %3998 = vmatpush1.bf16.msra.mxu0 %v5524_v20  ;;  %v5601_v20 = vld [vmem:[#allocation7 + $0x694] ss:$20 sps:$4 sm:$0xff]  }
 0x216   :  { %3999 = vmatprep.subr.bf16.mxu0 %v5532_v21  ;;  %v5604_v21 = vld [vmem:[#allocation7 + $0x69c] ss:$20 sps:$4 sm:$0xff]  }
 0x219   :  { %4000 = vmatpush1.bf16.msra.mxu0 %v5530_v22  ;;  %v5599_v22 = vld [vmem:[#allocation7 + $0x690] ss:$20 sps:$4 sm:$0xff]  }
 0x21a   :  { %4001 = vmatprep.subr.bf16.mxu0 %v5538_v23  ;;  %v5602_v23 = vld [vmem:[#allocation7 + $0x698] ss:$20 sps:$4 sm:$0xff]  }
 0x21d   :  { %4002 = vmatpush1.bf16.msra.mxu0 %v5536_v24  ;;  %v5607_v24 = vld [vmem:[#allocation7 + $0x6bc] ss:$20 sps:$4 sm:$0xff]  }
 0x21e   :  { %4012 = vmatprep.subr.bf16.mxu0 %v5544_v25  ;;  %v5610_v25 = vld [vmem:[#allocation7 + $0x6c4] ss:$20 sps:$4 sm:$0xff]  }
 0x232   :  { %v2102_v30 = vpop.f32.mrb[4].mxu1 }
 0x233   :  { %v4862_v31 = vadd.f32 %v2102_v30, %v404_v28  ;;  %v2104_v32 = vpop.f32.mrb[5].mxu1  ;;  %v5605_v28 = vld [vmem:[#allocation7 + $0x6b8] ss:$20 sps:$4 sm:$0xff]  }
 0x234   :  { %v4863_v33 = vadd.f32 %v2104_v32, %v408_v29  ;;  %v2106_v34 = vpop.f32.mrb[6].mxu1  ;;  %v5608_v29 = vld [vmem:[#allocation7 + $0x6c0] ss:$20 sps:$4 sm:$0xff]   ;;  %v5613_v30 = vld [vmem:[#allocation7 + $0x6e4] ss:$20 sps:$4 sm:$0xff]  }
 0x235   :  { %v2234_v9 = vmax.f32 %v4862_v31, 0.0  ;;  %v2107_v35 = vpop.f32.mrb[7].mxu1  ;;  %v5616_v31 = vld [vmem:[#allocation7 + $0x6ec] ss:$20 sps:$4 sm:$0xff]  }
 0x236   :  { %v2235_v49 = vmax.f32 %v4863_v33, 0.0  ;;  %v5611_v32 = vld [vmem:[#allocation7 + $0x6e0] ss:$20 sps:$4 sm:$0xff]   ;;  %v5614_v33 = vld [vmem:[#allocation7 + $0x6e8] ss:$20 sps:$4 sm:$0xff]   ;;  %v6008_v35 = vsub.s32 4, %v5966_v2 }
 0x237   :  { %v6001_v53 = vpack.c.bf16 %v2234_v9, %v2234_v9  ;;  %v5619_v34 = vld [vmem:[#allocation7 + $0x70c] ss:$20 sps:$4 sm:$0xff]   ;;  %v5622_v9 = vld [vmem:[#allocation7 + $0x714] ss:$20 sps:$4 sm:$0xff]  }
 0x238   :  { %v5999_v37 = vpack.c.bf16 %v2235_v49, %v2235_v49  ;;  %v5617_v49 = vld [vmem:[#allocation7 + $0x708] ss:$20 sps:$4 sm:$0xff]  }
 0x23a   :  { %3880 = vmatprep.mubr.bf16.mxu1 %v5999_v37  ;;  %4003 = vmatprep.mubr.bf16.mxu0 %v5999_v37 }
 0x23b   :  { %3881 = vmatmul.mubr.bf16.vlgmr.msra.gmra.mrb[8].mxu1 %v6001_v53  ;;  %4004 = vmatmul.mubr.bf16.vlgmr.msra.gmra.mrb[8].mxu0 %v6001_v53 }
 0x23c   :  { %3890 = vmatpush1.bf16.msra.mxu1 %v5539_v12  ;;  %4013 = vmatpush1.bf16.msra.mxu0 %v5542_v38  ;;  %v5620_v12 = vld [vmem:[#allocation7 + $0x710] ss:$20 sps:$4 sm:$0xff]   ;;  %v415_v38 = vsub.s32 5, %v5966_v2 }
 0x23d   :  { %3891 = vmatprep.subr.bf16.mxu1 %v5547_v18  ;;  %4014 = vmatprep.subr.bf16.mxu0 %v5550_v36  ;;  %v5625_v18 = vld [vmem:[#allocation7 + $0x734] ss:$20 sps:$4 sm:$0xff]   ;;  %v5628_v36 = vld [vmem:[#allocation7 + $0x73c] ss:$20 sps:$4 sm:$0xff]  }
 0x240   :  { %3892 = vmatpush1.bf16.msra.mxu1 %v5545_v42  ;;  %4015 = vmatpush1.bf16.msra.mxu0 %v5548_v43  ;;  %v412_v42 = vrot.slane %v5972_v40, %v6008_v35  ;;  %v5623_v43 = vld [vmem:[#allocation7 + $0x730] ss:$20 sps:$4 sm:$0xff]  }
 0x241   :  { %3893 = vmatprep.subr.bf16.mxu1 %v5553_v44  ;;  %4016 = vmatprep.subr.bf16.mxu0 %v5556_v45  ;;  %v416_v44 = vrot.slane %v5972_v40, %v415_v38  ;;  %v5626_v45 = vld [vmem:[#allocation7 + $0x738] ss:$20 sps:$4 sm:$0xff]   ;;  %v5671_v38 = vld [vmem:[#allocation7 + $0x6a0] ss:$20 sps:$4 sm:$0xff]  }
 0x244   :  { %3894 = vmatpush1.bf16.msra.mxu1 %v5551_v46  ;;  %4017 = vmatpush1.bf16.msra.mxu0 %v5554_v50  ;;  %v5631_v46 = vld [vmem:[#allocation7 + $0x75c] ss:$20 sps:$4 sm:$0xff]   ;;  %v5634_v50 = vld [vmem:[#allocation7 + $0x764] ss:$20 sps:$4 sm:$0xff]  }
 0x245   :  { %3895 = vmatprep.subr.bf16.mxu1 %v5559_v51  ;;  %4018 = vmatprep.subr.bf16.mxu0 %v5562_v52 }
 0x248   :  { %3896 = vmatpush1.bf16.msra.mxu1 %v5557_v54  ;;  %4019 = vmatpush1.bf16.msra.mxu0 %v5560_v55 }
 0x249   :  { %3897 = vmatprep.subr.bf16.mxu1 %v5565_v56  ;;  %4020 = vmatprep.subr.bf16.mxu0 %v5568_v57  ;;  %v5629_v57 = vld [vmem:[#allocation7 + $0x758] ss:$20 sps:$4 sm:$0xff]  }
 0x24c   :  { %3898 = vmatpush1.bf16.msra.mxu1 %v5563_v58  ;;  %4021 = vmatpush1.bf16.msra.mxu0 %v5566_v59  ;;  %v5632_v58 = vld [vmem:[#allocation7 + $0x760] ss:$20 sps:$4 sm:$0xff]  }
 0x24d   :  { %3899 = vmatprep.subr.bf16.mxu1 %v5571_v60  ;;  %4022 = vmatprep.subr.bf16.mxu0 %v5574_v61  ;;  %v5635_v61 = vld [vmem:[#allocation7 + $0x150] ss:$20 sps:$4 sm:$0xff]  }
 0x250   :  { %3900 = vmatpush1.bf16.msra.mxu1 %v5569_v47  ;;  %4023 = vmatpush1.bf16.msra.mxu0 %v5572_v63  ;;  %v5636_v63 = vld [vmem:[#allocation7 + $0x10] ss:$20 sps:$4 sm:$0xff]  }
 0x251   :  { %3901 = vmatprep.subr.bf16.mxu1 %v5577_v48  ;;  %4024 = vmatprep.subr.bf16.mxu0 %v5580_v1  ;;  %v5637_v1 = vld [vmem:[#allocation7 + $0x178] ss:$20 sps:$4 sm:$0xff]  }
 0x254   :  { %3902 = vmatpush1.bf16.msra.mxu1 %v5575_v3  ;;  %4025 = vmatpush1.bf16.msra.mxu0 %v5578_v4  ;;  %v5638_v3 = vld [vmem:[#allocation7 + $0x38] ss:$20 sps:$4 sm:$0xff]   ;;  %v5639_v4 = vld [vmem:[#allocation7 + $0x1a0] ss:$20 sps:$4 sm:$0xff]  }
 0x255   :  { %3903 = vmatprep.subr.bf16.mxu1 %v5583_v5  ;;  %4026 = vmatprep.subr.bf16.mxu0 %v5586_v6  ;;  %v5640_v5 = vld [vmem:[#allocation7 + $0x60] ss:$20 sps:$4 sm:$0xff]   ;;  %v5641_v6 = vld [vmem:[#allocation7 + $0x1c8] ss:$20 sps:$4 sm:$0xff]  }
 0x258   :  { %3904 = vmatpush1.bf16.msra.mxu1 %v5581_v7  ;;  %4027 = vmatpush1.bf16.msra.mxu0 %v5584_v8  ;;  %v5642_v7 = vld [vmem:[#allocation7 + $0x88] ss:$20 sps:$4 sm:$0xff]   ;;  %v5643_v8 = vld [vmem:[#allocation7 + $0x1f0] ss:$20 sps:$4 sm:$0xff]  }
 0x259   :  { %3905 = vmatprep.subr.bf16.mxu1 %v5589_v10  ;;  %4028 = vmatprep.subr.bf16.mxu0 %v5592_v11  ;;  %v5644_v10 = vld [vmem:[#allocation7 + $0xb0] ss:$20 sps:$4 sm:$0xff]   ;;  %v5645_v11 = vld [vmem:[#allocation7 + $0x218] ss:$20 sps:$4 sm:$0xff]  }
 0x25c   :  { %3906 = vmatpush1.bf16.msra.mxu1 %v5587_v13  ;;  %4029 = vmatpush1.bf16.msra.mxu0 %v5590_v14  ;;  %v5646_v13 = vld [vmem:[#allocation7 + $0xd8] ss:$20 sps:$4 sm:$0xff]   ;;  %v5647_v14 = vld [vmem:[#allocation7 + $0x240] ss:$20 sps:$4 sm:$0xff]  }
 0x25d   :  { %3907 = vmatprep.subr.bf16.mxu1 %v5595_v15  ;;  %4030 = vmatprep.subr.bf16.mxu0 %v5598_v16  ;;  %v5649_v15 = vld [vmem:[#allocation7 + $0x268] ss:$20 sps:$4 sm:$0xff]  }
 0x25e   :  { %v5650_v16 = vld [vmem:[#allocation7 + $0x128] ss:$20 sps:$4 sm:$0xff]  }
 0x260   :  { %3908 = vmatpush1.bf16.msra.mxu1 %v5593_v17  ;;  %4031 = vmatpush1.bf16.msra.mxu0 %v5596_v19  ;;  %v5651_v17 = vld [vmem:[#allocation7 + $0x3d0] ss:$20 sps:$4 sm:$0xff]  }
 0x261   :  { %3909 = vmatprep.subr.bf16.mxu1 %v5601_v20  ;;  %4032 = vmatprep.subr.bf16.mxu0 %v5604_v21  ;;  %v5652_v19 = vld [vmem:[#allocation7 + $0x290] ss:$20 sps:$4 sm:$0xff]   ;;  %v5653_v20 = vld [vmem:[#allocation7 + $0x3f8] ss:$20 sps:$4 sm:$0xff]  }
 0x262   :  { %v5654_v21 = vld [vmem:[#allocation7 + $0x2b8] ss:$20 sps:$4 sm:$0xff]  }
 0x264   :  { %3910 = vmatpush1.bf16.msra.mxu1 %v5599_v22  ;;  %4033 = vmatpush1.bf16.msra.mxu0 %v5602_v23  ;;  %v5655_v22 = vld [vmem:[#allocation7 + $0x420] ss:$20 sps:$4 sm:$0xff]  }
 0x265   :  { %3911 = vmatprep.subr.bf16.mxu1 %v5607_v24  ;;  %4034 = vmatprep.subr.bf16.mxu0 %v5610_v25  ;;  %v5656_v23 = vld [vmem:[#allocation7 + $0x2e0] ss:$20 sps:$4 sm:$0xff]   ;;  %v5657_v24 = vld [vmem:[#allocation7 + $0x448] ss:$20 sps:$4 sm:$0xff]  }
 0x266   :  { %v5658_v25 = vld [vmem:[#allocation7 + $0x308] ss:$20 sps:$4 sm:$0xff]  }
 0x268   :  { %3912 = vmatpush1.bf16.msra.mxu1 %v5605_v28  ;;  %4035 = vmatpush1.bf16.msra.mxu0 %v5608_v29  ;;  %v5659_v28 = vld [vmem:[#allocation7 + $0x470] ss:$20 sps:$4 sm:$0xff]  }
 0x269   :  { %3913 = vmatprep.subr.bf16.mxu1 %v5613_v30  ;;  %4036 = vmatprep.subr.bf16.mxu0 %v5616_v31  ;;  %v5660_v29 = vld [vmem:[#allocation7 + $0x330] ss:$20 sps:$4 sm:$0xff]   ;;  %v5661_v30 = vld [vmem:[#allocation7 + $0x498] ss:$20 sps:$4 sm:$0xff]   ;;  %v5663_v31 = vld [vmem:[#allocation7 + $0x4c0] ss:$20 sps:$4 sm:$0xff]  }
 0x26c   :  { %3914 = vmatpush1.bf16.msra.mxu1 %v5611_v32  ;;  %4037 = vmatpush1.bf16.msra.mxu0 %v5614_v33  ;;  %v5665_v32 = vld [vmem:[#allocation7 + $0x4e8] ss:$20 sps:$4 sm:$0xff]  }
 0x26d   :  { %3915 = vmatprep.subr.bf16.mxu1 %v5619_v34  ;;  %4038 = vmatprep.subr.bf16.mxu0 %v5622_v9  ;;  %v5666_v33 = vld [vmem:[#allocation7 + $0x3a8] ss:$20 sps:$4 sm:$0xff]   ;;  %v5667_v34 = vld [vmem:[#allocation7 + $0x650] ss:$20 sps:$4 sm:$0xff]  }
 0x26e   :  { %v5668_v9 = vld [vmem:[#allocation7 + $0x510] ss:$20 sps:$4 sm:$0xff]  }
 0x270   :  { %3916 = vmatpush1.bf16.msra.mxu1 %v5617_v49  ;;  %4039 = vmatpush1.bf16.msra.mxu0 %v5620_v12  ;;  %v5669_v49 = vld [vmem:[#allocation7 + $0x678] ss:$20 sps:$4 sm:$0xff]  }
 0x271   :  { %3917 = vmatprep.subr.bf16.mxu1 %v5625_v18  ;;  %4040 = vmatprep.subr.bf16.mxu0 %v5628_v36  ;;  %v5670_v12 = vld [vmem:[#allocation7 + $0x538] ss:$20 sps:$4 sm:$0xff]   ;;  %v5672_v18 = vld [vmem:[#allocation7 + $0x560] ss:$20 sps:$4 sm:$0xff]   ;;  %v5673_v36 = vld [vmem:[#allocation7 + $0x6c8] ss:$20 sps:$4 sm:$0xff]  }
 0x273   :  { %v2225_v51 = vpop.f32.mrb[4].mxu0 }
 0x274   :  { %v4864_v52 = vadd.f32 %v2225_v51, %v412_v42  ;;  %v2227_v54 = vpop.f32.mrb[5].mxu0  ;;  %3918 = vmatpush1.bf16.msra.mxu1 %v5623_v43  ;;  %4041 = vmatpush1.bf16.msra.mxu0 %v5626_v45  ;;  %v5674_v42 = vld [vmem:[#allocation7 + $0x588] ss:$20 sps:$4 sm:$0xff]   ;;  %v5675_v43 = vld [vmem:[#allocation7 + $0x6f0] ss:$20 sps:$4 sm:$0xff]  }
 0x275   :  { %v4865_v55 = vadd.f32 %v2227_v54, %v416_v44  ;;  %v2229_v56 = vpop.f32.mrb[6].mxu0  ;;  %3919 = vmatprep.subr.bf16.mxu1 %v5631_v46  ;;  %4042 = vmatprep.subr.bf16.mxu0 %v5634_v50  ;;  %v5676_v44 = vld [vmem:[#allocation7 + $0x5b0] ss:$20 sps:$4 sm:$0xff]   ;;  %v5677_v45 = vld [vmem:[#allocation7 + $0x718] ss:$20 sps:$4 sm:$0xff]  }
 0x276   :  { %v2236_v59 = vmax.f32 %v4864_v52, 0.0  ;;  %v2230_v60 = vpop.f32.mrb[7].mxu0  ;;  %v5679_v46 = vld [vmem:[#allocation7 + $0x740] ss:$20 sps:$4 sm:$0xff]   ;;  %v5681_v51 = vld [vmem:[#allocation7 + $0x768] ss:$20 sps:$4 sm:$0xff]  }
 0x277   :  { %v2237_v40 = vmax.f32 %v4865_v55, 0.0  ;;  %v5680_v50 = vld [vmem:[#allocation7 + $0x600] ss:$20 sps:$4 sm:$0xff]   ;;  %v5682_v52 = vld [vmem:[#allocation7 + $0x628] ss:$20 sps:$4 sm:$0xff]  }
 0x278   :  { %3920 = vmatpush1.bf16.msra.mxu1 %v5629_v57  ;;  %4043 = vmatpush1.bf16.msra.mxu0 %v5632_v58  ;;  %v6016_v48 = vpack.c.bf16 %v2236_v59, %v2236_v59  ;;  %v4178_v54 = vld [vmem:[#allocation10] sm:$0x1f]  ;;  %v2532_v56 = vld [vmem:[#allocation8] sm:$0x1f] }
 0x279   :  { %v6014_v47 = vpack.c.bf16 %v2237_v40, %v2237_v40  ;;  %4792 = vmatprep.subr.bf16.mxu1 %v5635_v61  ;;  %v4179_v55 = vunpack.c.l.bf16 %v4178_v54  ;;  %v2537_v57 = vrot.slane %v2532_v56, %v5970_v39  ;;  %v2545_v59 = vrot.slane %v2532_v56, %v5991_v26 }
 0x27a   :  { %v2541_v60 = vrot.slane %v2532_v56, %v399_v41  ;;  %v2549_v40 = vrot.slane %v2532_v56, %v407_v27 }
 0x27b   :  { %3921 = vmatprep.mubr.bf16.mxu1 %v6014_v47  ;;  %4044 = vmatprep.mubr.bf16.mxu0 %v6014_v47  ;;  %v4186_v58 = vrot.slane %v4179_v55, %v5970_v39  ;;  %v4190_v61 = vrot.slane %v4179_v55, %v5991_v26 }
 0x27c   :  { %3922 = vmatmul.mubr.bf16.vlgmr.msra.gmra.mrb[8].mxu1 %v6016_v48  ;;  %4045 = vmatmul.mubr.bf16.vlgmr.msra.gmra.mrb[8].mxu0 %v6016_v48 }
 0x27d   :  { %4793 = vmatpush3.bf16.msra.mxu1 %v5636_v63  ;;  %4085 = vmatprep.mubr.bf16.mxu1 %v5982_v62  ;;  %v5648_v62 = vld [vmem:[#allocation7 + $0x100] ss:$20 sps:$4 sm:$0xff]   ;;  %v4215_v41 = vrot.slane %v4190_v61, %v5970_v39 }
 0x27e   :  { %4794 = vmatprep.subr.bf16.mxu1 %v5637_v1  ;;  %v4194_v1 = vrot.slane %v4179_v55, %v6008_v35 }
 0x281   :  { %4795 = vmatpush3.bf16.msra.mxu1 %v5638_v3 }
 0x282   :  { %4796 = vmatprep.subr.bf16.mxu1 %v5639_v4  ;;  %v4211_v4 = vrot.slane %v4186_v58, %v5970_v39 }
 0x285   :  { %4797 = vmatpush3.bf16.msra.mxu1 %v5640_v5 }
 0x286   :  { %4798 = vmatprep.subr.bf16.mxu1 %v5641_v6 }
 0x289   :  { %4799 = vmatpush3.bf16.msra.mxu1 %v5642_v7 }
 0x28a   :  { %4800 = vmatprep.subr.bf16.mxu1 %v5643_v8 }
 0x28d   :  { %4801 = vmatpush3.bf16.msra.mxu1 %v5644_v10 }
 0x28e   :  { %4802 = vmatprep.subr.bf16.mxu1 %v5645_v11 }
 0x291   :  { %4803 = vmatpush3.bf16.msra.mxu1 %v5646_v13 }
 0x292   :  { %4804 = vmatprep.subr.bf16.mxu1 %v5647_v14 }
 0x295   :  { %4805 = vmatpush3.bf16.msra.mxu1 %v5648_v62 }
 0x296   :  { %4806 = vmatprep.subr.bf16.mxu1 %v5649_v15  ;;  %v4219_v15 = vrot.slane %v4194_v1, %v5970_v39 }
 0x299   :  { %4807 = vmatpush3.bf16.msra.mxu1 %v5650_v16 }
 0x29a   :  { %4814 = vmatprep.subr.bf16.mxu1 %v5651_v17 }
 0x29c   :  { %4086 = vmatmul.mubr.bf16.vlgmr.msra.gmra.mrb[12].mxu1 %v5984_v0  ;;  %v5662_v0 = vld [vmem:[#allocation7 + $0x358] ss:$20 sps:$4 sm:$0xff]  }
 0x29d   :  { %4815 = vmatpush3.bf16.msra.mxu1 %v5652_v19  ;;  %4125 = vmatprep.mubr.bf16.mxu1 %v5999_v37  ;;  %v5664_v37 = vld [vmem:[#allocation7 + $0x380] ss:$20 sps:$4 sm:$0xff]  }
 0x29e   :  { %4816 = vmatprep.subr.bf16.mxu1 %v5653_v20 }
 0x2a1   :  { %4817 = vmatpush3.bf16.msra.mxu1 %v5654_v21 }
 0x2a2   :  { %4818 = vmatprep.subr.bf16.mxu1 %v5655_v22 }
 0x2a5   :  { %4819 = vmatpush3.bf16.msra.mxu1 %v5656_v23 }
 0x2a6   :  { %4820 = vmatprep.subr.bf16.mxu1 %v5657_v24 }
 0x2a9   :  { %4821 = vmatpush3.bf16.msra.mxu1 %v5658_v25 }
 0x2aa   :  { %4822 = vmatprep.subr.bf16.mxu1 %v5659_v28 }
 0x2ad   :  { %4823 = vmatpush3.bf16.msra.mxu1 %v5660_v29 }
 0x2ae   :  { %4824 = vmatprep.subr.bf16.mxu1 %v5661_v30 }
 0x2b1   :  { %4825 = vmatpush3.bf16.msra.mxu1 %v5662_v0 }
 0x2b2   :  { %4826 = vmatprep.subr.bf16.mxu1 %v5663_v31 }
 0x2b5   :  { %4827 = vmatpush3.bf16.msra.mxu1 %v5664_v37 }
 0x2b6   :  { %4828 = vmatprep.subr.bf16.mxu1 %v5665_v32  ;;  %v2553_v32 = vrot.slane %v2532_v56, %v6008_v35  ;;  %v4790_v56 = vld [vmem:[#allocation2] ss:$0 sm:$0xff] }
 0x2b9   :  { %4829 = vmatpush3.bf16.msra.mxu1 %v5666_v33 }
 0x2ba   :  { %4836 = vmatprep.subr.bf16.mxu1 %v5667_v34 }
 0x2bc   :  { %4126 = vmatmul.mubr.bf16.vlgmr.msra.gmra.mrb[16].mxu1 %v6001_v53  ;;  %v5678_v53 = vld [vmem:[#allocation7 + $0x5d8] ss:$20 sps:$4 sm:$0xff]  }
 0x2bd   :  { %4837 = vmatpush3.bf16.msra.mxu1 %v5668_v9  ;;  %4165 = vmatprep.mubr.bf16.mxu1 %v6014_v47  ;;  %v4197_v47 = vsub.s32 6, %v5966_v2 }
 0x2be   :  { %4838 = vmatprep.subr.bf16.mxu1 %v5669_v49 }
 0x2bf   :  { %v4198_v26 = vrot.slane %v4179_v55, %v4197_v47 }
 0x2c1   :  { %4839 = vmatpush3.bf16.msra.mxu1 %v5670_v12  ;;  %v4223_v21 = vrot.slane %v4198_v26, %v5970_v39 }
 0x2c2   :  { %4840 = vmatprep.subr.bf16.mxu1 %v5671_v38 }
 0x2c5   :  { %4841 = vmatpush3.bf16.msra.mxu1 %v5672_v18 }
 0x2c6   :  { %4842 = vmatprep.subr.bf16.mxu1 %v5673_v36  ;;  %v4180_v36 = vunpack.c.h.bf16 %v4178_v54 }
 0x2c9   :  { %4843 = vmatpush3.bf16.msra.mxu1 %v5674_v42 }
 0x2ca   :  { %4844 = vmatprep.subr.bf16.mxu1 %v5675_v43  ;;  %v4202_v43 = vrot.slane %v4180_v36, %v5970_v39 }
 0x2cd   :  { %4845 = vmatpush3.bf16.msra.mxu1 %v5676_v44 }
 0x2ce   :  { %4846 = vmatprep.subr.bf16.mxu1 %v5677_v45 }
 0x2d1   :  { %4847 = vmatpush3.bf16.msra.mxu1 %v5678_v53 }
 0x2d2   :  { %4848 = vmatprep.subr.bf16.mxu1 %v5679_v46 }
 0x2d5   :  { %4849 = vmatpush3.bf16.msra.mxu1 %v5680_v50 }
 0x2d6   :  { %4850 = vmatprep.subr.bf16.mxu1 %v5681_v51  ;;  %v4227_v51 = vrot.slane %v4202_v43, %v5970_v39 }
 0x2d9   :  { %4851 = vmatpush3.bf16.msra.mxu1 %v5682_v52 }
 0x2dc   :  { %4166 = vmatmul.mubr.bf16.vlgmr.msra.gmra.mrb[20].mxu1 %v6016_v48 }
 0x34f   :  { %v3923_v63 = vpop.f32.mrb[8].mxu1  ;;  %v4046_v48 = vpop.f32.mrb[8].mxu0 }
 0x350   :  { %v4866_v3 = vadd.f32 %v3923_v63, %v2537_v57  ;;  %v4868_v5 = vadd.f32 %v4046_v48, %v2545_v59  ;;  %v3925_v6 = vpop.f32.mrb[9].mxu1  ;;  %v4048_v7 = vpop.f32.mrb[9].mxu0 }
 0x351   :  { %v4867_v8 = vadd.f32 %v3925_v6, %v2541_v60  ;;  %v4869_v10 = vadd.f32 %v4048_v7, %v2549_v40  ;;  %v3927_v11 = vpop.f32.mrb[10].mxu1  ;;  %v4050_v13 = vpop.f32.mrb[10].mxu0 }
 0x352   :  { %v4173_v27 = vmax.f32 %v4866_v3, 0.0  ;;  %v3928_v14 = vpop.f32.mrb[11].mxu1  ;;  %v4051_v2 = vpop.f32.mrb[11].mxu0  ;;  %v4175_v62 = vmax.f32 %v4868_v5, 0.0 }
 0x353   :  { %v4174_v16 = vmax.f32 %v4867_v8, 0.0  ;;  %v4176_v20 = vmax.f32 %v4869_v10, 0.0 }
 0x354   :  { %v4228_v17 = vmul.f32 %v4211_v4, %v4173_v27  ;;  %v4230_v22 = vmul.f32 %v4219_v15, %v4175_v62 }
 0x355   :  { %v4229_v19 = vmul.f32 %v4215_v41, %v4174_v16  ;;  %v4231_v24 = vmul.f32 %v4223_v21, %v4176_v20 }
 0x357   :  { %v4233_v23 = vadd.f32 %v4229_v19, %v4228_v17 }
 0x359   :  { %v4234_v25 = vadd.f32 %v4233_v23, %v4230_v22 }
 0x35b   :  { %v4235_v28 = vadd.f32 %v4234_v25, %v4231_v24 }
 0x36f   :  { %v4808_v29 = vpop.f32.mrb[12].mxu1 }
 0x370   :  { %v4809_v30 = vpop.f32.mrb[13].mxu1 }
 0x371   :  { %v4810_v0 = vadd.f32 %v4809_v30, %v4808_v29  ;;  %v4811_v31 = vpop.f32.mrb[14].mxu1 }
 0x372   :  { %v4812_v37 = vpop.f32.mrb[15].mxu1 }
 0x373   :  { %v4088_v9 = vadd.f32 %v4810_v0, %v2553_v32 }
 0x38f   :  { %v4830_v33 = vpop.f32.mrb[16].mxu1 }
 0x390   :  { %v4831_v34 = vpop.f32.mrb[17].mxu1 }
 0x391   :  { %v4832_v49 = vadd.f32 %v4831_v34, %v4830_v33  ;;  %v4833_v12 = vpop.f32.mrb[18].mxu1 }
 0x392   :  { %v4834_v38 = vpop.f32.mrb[19].mxu1 }
 0x393   :  { %v4128_v18 = vadd.f32 %v4832_v49, %v4088_v9 }
 0x3af   :  { %v4852_v42 = vpop.f32.mrb[20].mxu1 }
 0x3b0   :  { %v4853_v44 = vpop.f32.mrb[21].mxu1 }
 0x3b1   :  { %v4854_v45 = vadd.f32 %v4853_v44, %v4852_v42  ;;  %v4855_v53 = vpop.f32.mrb[22].mxu1 }
 0x3b2   :  { %v4856_v46 = vpop.f32.mrb[23].mxu1 }
 0x3b3   :  { %v4168_v50 = vadd.f32 %v4854_v45, %v4128_v18 }
 0x3b5   :  { %v4177_v52 = vmax.f32 %v4168_v50, 0.0 }
 0x3b7   :  { %v4232_v35 = vmul.f32 %v4227_v51, %v4177_v52 }
 0x3b9   :  { %v4236_v55 = vadd.f32 %v4235_v28, %v4232_v35 }
 0x3bb   :  { %4237 = vadd.xlane.f32.xlu0 %v4236_v55 }
 0x448   :  { %v4238_v57 = vpop.xlane.xlu0 %4237 }
 0x449   :  { %v4246_v58 = vadd.f32 %v4790_v56, %v4238_v57 }
 0x44b   :  { %v4791_v59 = vmul.f32 -1.442695, %v4246_v58 }
 0x44d   :  { %5683 = vpow2.f32 %v4791_v59 }
 0x457   :  { %v5684_v54 = vpop.eup %5683 }
 0x458   :  { %v4250_v60 = vadd.f32 1.0, %v5684_v54 }
 0x45a   :  { %5685 = vrcp.f32 %v4250_v60 }
 0x464   :  { %v5686_v61 = vpop.eup %5685 }
 0x465   :  { %4254 = vst.msk [vmem:[%s6055_s7] sm:$0xff] %vm4253_vm0, %v5686_v61 }
 0x466   :  { %4259 = vsyncpa [#allocation4], 1 }
 0x467   :  { %4260 = vsyncpa [#allocation6], 1 }
 0x468   :  { %4261 = vsyncpa [#allocation9], 1 }

</bundles_post_ra>
